<compile_context>
chip_gen: v7x
topology: tpu7x:2x2x1
jax: 0.10.0
libtpu: 0.0.40
codegen_flags: <defaults>
</compile_context>

<pallas_src>
import jax
import jax.numpy as jnp
from jax.experimental import pallas as pl
from jax.experimental.pallas import tpu as pltpu

N_HIDDEN = 1024
N_MID = 512
N_CAT = 26
N_CONT = 3
N_HEAD_PAD = 128  # lane-dense padded head output width


def emotic_kernel(ctx_ref, body_ref, w1c_ref, w1b_ref, b1_ref,
                  wf_ref, bf_ref, head_ref):
    # fc1 as a split-K matmul over [context | body]; BatchNorm (eval) is
    # pre-folded into the bf16 weights and the f32 bias. bf16 MXU, f32 accum.
    h1 = jnp.dot(ctx_ref[...], w1c_ref[...], preferred_element_type=jnp.float32)
    h1 = h1 + jnp.dot(body_ref[...], w1b_ref[...],
                      preferred_element_type=jnp.float32)
    h1 = jnp.maximum(h1 + b1_ref[...], 0.0)

    # fc2 + both heads folded into a single (1024, 128) lane-dense matmul
    # (eval-mode dropout == identity, no nonlinearity between fc2 and heads).
    # Output cols [0:26] = fc_cat, [26:29] = fc_cont, rest = zero padding.
    head_ref[...] = jnp.dot(h1.astype(jnp.bfloat16), wf_ref[...],
                            preferred_element_type=jnp.float32) + bf_ref[...]


def prepare_params(params, eps=1e-5):
    """One-time parameter prep: fold BN into fc1, fold fc2 into the fused
    zero-padded heads, cast weights to bf16 once."""
    scale = params["bn_gamma"] / jnp.sqrt(params["bn_var"] + eps)
    w1 = params["w1"] * scale[None, :]
    b1 = params["b1"] * scale + params["bn_beta"] - params["bn_mean"] * scale

    num_ctx = params["num_context_features"]
    w1_ctx = w1[:num_ctx]
    w1_body = w1[num_ctx:]

    # Fuse the two heads into one zero-padded (512, 128) lane-dense weight.
    w_heads = jnp.zeros((N_MID, N_HEAD_PAD), jnp.float32)
    w_heads = w_heads.at[:, :N_CAT].set(params["w_cat"])
    w_heads = w_heads.at[:, N_CAT:N_CAT + N_CONT].set(params["w_cont"])
    b_heads = jnp.zeros((N_HEAD_PAD,), jnp.float32)
    b_heads = b_heads.at[:N_CAT].set(params["b_cat"])
    b_heads = b_heads.at[N_CAT:N_CAT + N_CONT].set(params["b_cont"])

    # Fold fc2 into the fused head (valid for eval semantics only: dropout is
    # identity and there is no nonlinearity between fc2 and the heads).
    # Fold in f32, cast to bf16 once.
    w_fold = params["w2"] @ w_heads                 # (1024, 128)
    b_fold = params["b2"] @ w_heads + b_heads       # (128,)

    return dict(
        w1_ctx=w1_ctx.astype(jnp.bfloat16),
        w1_body=w1_body.astype(jnp.bfloat16),
        b1=b1[None, :].astype(jnp.float32),
        w_fold=w_fold.astype(jnp.bfloat16),
        b_fold=b_fold[None, :].astype(jnp.float32),
    )


def _round_up(x, m):
    return ((x + m - 1) // m) * m


def _pick_batch_tile(B, block_batch):
    """Batch tile: multiple of 16 sublanes (bf16 packing), <= block_batch,
    preferring (a) >= 2 grid steps so v7x's two TensorCores both get work and
    (b) a tile that divides B so no jnp.pad HBM round-trip is needed."""
    block_batch = max(16, (block_batch // 16) * 16)
    if B <= 16:
        return 16
    if B <= block_batch:
        # Split into (at least) two tiles for megacore sharding on v7x.
        return _round_up(_round_up(B, 2) // 2, 16)
    # Large batch: largest multiple-of-16 tile <= block_batch that divides B
    # (avoids the pad pass); otherwise just use block_batch and pad the tail.
    t = block_batch
    floor = max(128, block_batch // 4)
    while t >= floor:
        if B % t == 0:
            return t
        t -= 16
    return block_batch


def emotic_forward(x_context, x_body, prep, *, block_batch=512):
    B = x_context.shape[0]
    cc = prep["w1_ctx"].shape[0]
    cb = prep["w1_body"].shape[0]

    # bf16 activations at the pallas_call boundary: halves activation HBM
    # traffic and removes the per-tile VPU casts inside the kernel.
    ctx = x_context.reshape(B, cc).astype(jnp.bfloat16)
    body = x_body.reshape(B, cb).astype(jnp.bfloat16)

    tb = _pick_batch_tile(B, block_batch)
    nb = pl.cdiv(B, tb)
    b_pad = nb * tb
    if b_pad != B:
        ctx = jnp.pad(ctx, ((0, b_pad - B), (0, 0)))
        body = jnp.pad(body, ((0, b_pad - B), (0, 0)))

    weight_bytes = sum(int(v.size) * v.dtype.itemsize for v in prep.values())
    cost = pl.CostEstimate(
        flops=2 * b_pad * ((cc + cb) * N_HIDDEN + N_HIDDEN * N_HEAD_PAD),
        transcendentals=0,
        bytes_accessed=(b_pad * (cc + cb) * 2) + weight_bytes
        + b_pad * N_HEAD_PAD * 4,
    )

    const = lambda i: (0, 0)   # weights/biases stay resident across the grid
    row = lambda i: (i, 0)     # activations tiled over batch

    heads = pl.pallas_call(
        emotic_kernel,
        out_shape=jax.ShapeDtypeStruct((b_pad, N_HEAD_PAD), jnp.float32),
        grid=(nb,),
        in_specs=[
            pl.BlockSpec((tb, cc), row),
            pl.BlockSpec((tb, cb), row),
            pl.BlockSpec((cc, N_HIDDEN), const),
            pl.BlockSpec((cb, N_HIDDEN), const),
            pl.BlockSpec((1, N_HIDDEN), const),
            pl.BlockSpec((N_HIDDEN, N_HEAD_PAD), const),
            pl.BlockSpec((1, N_HEAD_PAD), const),
        ],
        out_specs=pl.BlockSpec((tb, N_HEAD_PAD), row),
        compiler_params=pltpu.CompilerParams(
            dimension_semantics=("parallel",)),
        cost_estimate=cost,
    )(ctx, body, prep["w1_ctx"], prep["w1_body"], prep["b1"],
      prep["w_fold"], prep["b_fold"])

    cat_out = heads[:B, :N_CAT]
    cont_out = heads[:B, N_CAT:N_CAT + N_CONT]
    return cat_out, cont_out


def init_params(key, num_context_features, num_body_features,
                n_hidden=N_HIDDEN, n_mid=N_MID):
    ks = jax.random.split(key, 8)
    f_in = num_context_features + num_body_features

    def lin(k, fan_in, fan_out):
        bound = 1.0 / jnp.sqrt(fan_in)
        kw, kb = jax.random.split(k)
        w = jax.random.uniform(kw, (fan_in, fan_out), jnp.float32, -bound, bound)
        b = jax.random.uniform(kb, (fan_out,), jnp.float32, -bound, bound)
        return w, b

    w1, b1 = lin(ks[0], f_in, n_hidden)
    w2, b2 = lin(ks[1], n_hidden, n_mid)
    w_cat, b_cat = lin(ks[2], n_mid, N_CAT)
    w_cont, b_cont = lin(ks[3], n_mid, N_CONT)

    bn_gamma = 1.0 + 0.1 * jax.random.normal(ks[4], (n_hidden,), jnp.float32)
    bn_beta = 0.1 * jax.random.normal(ks[5], (n_hidden,), jnp.float32)
    bn_mean = 0.05 * jax.random.normal(ks[6], (n_hidden,), jnp.float32)
    bn_var = jnp.abs(1.0 + 0.1 * jax.random.normal(ks[7], (n_hidden,), jnp.float32))

    return dict(w1=w1, b1=b1, w2=w2, b2=b2,
                w_cat=w_cat, b_cat=b_cat, w_cont=w_cont, b_cont=b_cont,
                bn_gamma=bn_gamma, bn_beta=bn_beta,
                bn_mean=bn_mean, bn_var=bn_var,
                num_context_features=num_context_features,
                num_body_features=num_body_features)


def reference_forward_f32(x_context, x_body, params, eps=1e-5):
    """Pure-JAX f32 reference matching the PyTorch module in eval mode."""
    B = x_context.shape[0]
    fuse = jnp.concatenate([x_context.reshape(B, -1), x_body.reshape(B, -1)], 1)
    h1 = fuse @ params["w1"] + params["b1"]
    h1 = (h1 - params["bn_mean"]) / jnp.sqrt(params["bn_var"] + eps)
    h1 = h1 * params["bn_gamma"] + params["bn_beta"]
    h1 = jnp.maximum(h1, 0.0)
    h2 = h1 @ params["w2"] + params["b2"]
    return (h2 @ params["w_cat"] + params["b_cat"],
            h2 @ params["w_cont"] + params["b_cont"])


def reference_forward_prepped(x_context, x_body, prep):
    """Reference with the same bf16 weight/activation quantization as the kernel."""
    f32 = lambda a: a.astype(jnp.float32)
    q = lambda a: a.astype(jnp.bfloat16).astype(jnp.float32)
    B = x_context.shape[0]
    cc = prep["w1_ctx"].shape[0]
    cb = prep["w1_body"].shape[0]
    ctx = q(x_context.reshape(B, cc))
    body = q(x_body.reshape(B, cb))
    h1 = ctx @ f32(prep["w1_ctx"]) + body @ f32(prep["w1_body"]) + prep["b1"]
    h1 = jnp.maximum(h1, 0.0)
    heads = q(h1) @ f32(prep["w_fold"]) + prep["b_fold"]
    return heads[:, :N_CAT], heads[:, N_CAT:N_CAT + N_CONT]


if __name__ == "__main__":
    num_context_features = 256
    num_body_features = 128
    batch = 8

    key = jax.random.PRNGKey(0)
    k_ctx, k_body, k_params = jax.random.split(key, 3)

    x_context = jax.random.normal(k_ctx, (batch, num_context_features), jnp.float32)
    x_body = jax.random.normal(k_body, (batch, num_body_features), jnp.float32)
    params = init_params(k_params, num_context_features, num_body_features)
    prep = prepare_params(params)

    cat_out, cont_out = emotic_forward(x_context, x_body, prep)
    jax.block_until_ready((cat_out, cont_out))

    assert cat_out.shape == (batch, N_CAT) and cont_out.shape == (batch, N_CONT)

    # Tight check vs. a reference using identical bf16 quantization + folding.
    cat_q, cont_q = reference_forward_prepped(x_context, x_body, prep)
    assert jnp.allclose(cat_out, cat_q, atol=2e-3, rtol=2e-3)
    assert jnp.allclose(cont_out, cont_q, atol=2e-3, rtol=2e-3)

    # Loose semantic check vs. the full-precision eval-mode reference.
    cat_f, cont_f = reference_forward_f32(x_context, x_body, params)
    assert jnp.allclose(cat_out, cat_f, atol=5e-2, rtol=5e-2)
    assert jnp.allclose(cont_out, cont_f, atol=5e-2, rtol=5e-2)

    print("KERNEL_OK")
</pallas_src>

<mosaic_0001>
module attributes {stable_mosaic.version = 11 : i64} {
  func.func @emotic_kernel(%arg0: i32, %arg1: memref<16x256xbf16, #tpu.memory_space<vmem>>, %arg2: memref<16x128xbf16, #tpu.memory_space<vmem>>, %arg3: memref<256x1024xbf16, #tpu.memory_space<vmem>>, %arg4: memref<128x1024xbf16, #tpu.memory_space<vmem>>, %arg5: memref<1x1024xf32, #tpu.memory_space<vmem>>, %arg6: memref<1024x128xbf16, #tpu.memory_space<vmem>>, %arg7: memref<1x128xf32, #tpu.memory_space<vmem>>, %arg8: memref<16x128xf32, #tpu.memory_space<vmem>>) attributes {dimension_semantics = [#tpu.dimension_semantics<parallel>], iteration_bounds = array<i64: 1>, scalar_prefetch = 0 : i64, scratch_operands = 0 : i64, tpu.core_type = #tpu.core_type<tc>, window_params = [{transform_indices = @transform_0, window_bounds = array<i64: 16, 256>}, {transform_indices = @transform_1, window_bounds = array<i64: 16, 128>}, {pipeline_mode = #tpu.pipeline_mode<synchronous>, transform_indices = @transform_2, window_bounds = array<i64: 256, 1024>}, {pipeline_mode = #tpu.pipeline_mode<synchronous>, transform_indices = @transform_3, window_bounds = array<i64: 128, 1024>}, {pipeline_mode = #tpu.pipeline_mode<synchronous>, transform_indices = @transform_4, window_bounds = array<i64: 1, 1024>}, {pipeline_mode = #tpu.pipeline_mode<synchronous>, transform_indices = @transform_5, window_bounds = array<i64: 1024, 128>}, {pipeline_mode = #tpu.pipeline_mode<synchronous>, transform_indices = @transform_6, window_bounds = array<i64: 1, 128>}, {transform_indices = @transform_7, window_bounds = array<i64: 16, 128>}]} {
    %c0 = arith.constant 0 : index
    %c0_0 = arith.constant 0 : index
    %0 = vector.load %arg1[%c0, %c0_0] : memref<16x256xbf16, #tpu.memory_space<vmem>>, vector<16x256xbf16>
    %c0_1 = arith.constant 0 : index
    %c0_2 = arith.constant 0 : index
    %1 = vector.load %arg3[%c0_1, %c0_2] : memref<256x1024xbf16, #tpu.memory_space<vmem>>, vector<256x1024xbf16>
    %cst = arith.constant dense<0.000000e+00> : vector<16x1024xf32>
    %2 = tpu.matmul %0, %1, %cst {dimension_numbers = #tpu.dot_dimension_numbers<[1], [0], [0], [1], [0, 0, 1, 1], [], []>} : vector<16x256xbf16>, vector<256x1024xbf16>, vector<16x1024xf32> -> vector<16x1024xf32>
    %c0_3 = arith.constant 0 : index
    %c0_4 = arith.constant 0 : index
    %3 = vector.load %arg2[%c0_3, %c0_4] : memref<16x128xbf16, #tpu.memory_space<vmem>>, vector<16x128xbf16>
    %c0_5 = arith.constant 0 : index
    %c0_6 = arith.constant 0 : index
    %4 = vector.load %arg4[%c0_5, %c0_6] : memref<128x1024xbf16, #tpu.memory_space<vmem>>, vector<128x1024xbf16>
    %cst_7 = arith.constant dense<0.000000e+00> : vector<16x1024xf32>
    %5 = tpu.matmul %3, %4, %cst_7 {dimension_numbers = #tpu.dot_dimension_numbers<[1], [0], [0], [1], [0, 0, 1, 1], [], []>} : vector<16x128xbf16>, vector<128x1024xbf16>, vector<16x1024xf32> -> vector<16x1024xf32>
    %6 = arith.addf %2, %5 : vector<16x1024xf32>
    %c0_8 = arith.constant 0 : index
    %c0_9 = arith.constant 0 : index
    %7 = vector.load %arg5[%c0_8, %c0_9] : memref<1x1024xf32, #tpu.memory_space<vmem>>, vector<1x1024xf32>
    %8 = vector.broadcast %7 : vector<1x1024xf32> to vector<16x1024xf32>
    %9 = arith.addf %6, %8 : vector<16x1024xf32>
    %cst_10 = arith.constant 0.000000e+00 : f32
    %10 = vector.broadcast %cst_10 : f32 to vector<16x1024xf32>
    %11 = arith.maximumf %9, %10 : vector<16x1024xf32>
    %12 = arith.truncf %11 : vector<16x1024xf32> to vector<16x1024xbf16>
    %c0_11 = arith.constant 0 : index
    %c0_12 = arith.constant 0 : index
    %13 = vector.load %arg6[%c0_11, %c0_12] : memref<1024x128xbf16, #tpu.memory_space<vmem>>, vector<1024x128xbf16>
    %cst_13 = arith.constant dense<0.000000e+00> : vector<16x128xf32>
    %14 = tpu.matmul %12, %13, %cst_13 {dimension_numbers = #tpu.dot_dimension_numbers<[1], [0], [0], [1], [0, 0, 1, 1], [], []>} : vector<16x1024xbf16>, vector<1024x128xbf16>, vector<16x128xf32> -> vector<16x128xf32>
    %c0_14 = arith.constant 0 : index
    %c0_15 = arith.constant 0 : index
    %15 = vector.load %arg7[%c0_14, %c0_15] : memref<1x128xf32, #tpu.memory_space<vmem>>, vector<1x128xf32>
    %16 = vector.broadcast %15 : vector<1x128xf32> to vector<16x128xf32>
    %17 = arith.addf %14, %16 : vector<16x128xf32>
    %c0_16 = arith.constant 0 : index
    %c0_17 = arith.constant 0 : index
    %18 = vector.load %arg8[%c0_16, %c0_17] : memref<16x128xf32, #tpu.memory_space<vmem>>, vector<16x128xf32>
    tpu.vector_store %arg8[%c0_16, %c0_17], %17 {strides = array<i32>} : memref<16x128xf32, #tpu.memory_space<vmem>>, vector<16x128xf32>,
    return
  }
  func.func @transform_0(%arg0: i32) -> (i32, i32) {
    %c0_i32 = arith.constant 0 : i32
    %c0_i32_0 = arith.constant 0 : i32
    return %arg0, %c0_i32 : i32, i32
  }
  func.func @transform_1(%arg0: i32) -> (i32, i32) {
    %c0_i32 = arith.constant 0 : i32
    %c0_i32_0 = arith.constant 0 : i32
    return %arg0, %c0_i32 : i32, i32
  }
  func.func @transform_2(%arg0: i32) -> (i32, i32) {
    %c0_i32 = arith.constant 0 : i32
    %c0_i32_0 = arith.constant 0 : i32
    %c0_i32_1 = arith.constant 0 : i32
    return %c0_i32, %c0_i32_0 : i32, i32
  }
  func.func @transform_3(%arg0: i32) -> (i32, i32) {
    %c0_i32 = arith.constant 0 : i32
    %c0_i32_0 = arith.constant 0 : i32
    %c0_i32_1 = arith.constant 0 : i32
    return %c0_i32, %c0_i32_0 : i32, i32
  }
  func.func @transform_4(%arg0: i32) -> (i32, i32) {
    %c0_i32 = arith.constant 0 : i32
    %c0_i32_0 = arith.constant 0 : i32
    %c0_i32_1 = arith.constant 0 : i32
    return %c0_i32, %c0_i32_0 : i32, i32
  }
  func.func @transform_5(%arg0: i32) -> (i32, i32) {
    %c0_i32 = arith.constant 0 : i32
    %c0_i32_0 = arith.constant 0 : i32
    %c0_i32_1 = arith.constant 0 : i32
    return %c0_i32, %c0_i32_0 : i32, i32
  }
  func.func @transform_6(%arg0: i32) -> (i32, i32) {
    %c0_i32 = arith.constant 0 : i32
    %c0_i32_0 = arith.constant 0 : i32
    %c0_i32_1 = arith.constant 0 : i32
    return %c0_i32, %c0_i32_0 : i32, i32
  }
  func.func @transform_7(%arg0: i32) -> (i32, i32) {
    %c0_i32 = arith.constant 0 : i32
    %c0_i32_0 = arith.constant 0 : i32
    return %arg0, %c0_i32 : i32, i32
  }
}

</mosaic_0001>

<bundles_post_ra>
// kernel: tpu_custom_call.1
= control target key start
LH: loop header
LB: loop body
LE: loop exit
PB: predicated region body
PF: predicated region fallthrough
CT: control target
= control target key end

     0   :  { %12 = vsyncpa [#allocation3], 0  ;;  %s3174_s0 = inlined_call_operand.hbm [shape: bf16[16,256], index: 0, kind: input, shape index: {}]   ;;  %s3175_s1 = inlined_call_operand.hbm [shape: bf16[16,128], index: 1, kind: input, shape index: {}]   ;;  %s3176_s2 = inlined_call_operand.hbm [shape: bf16[256,1024], index: 2, kind: input, shape index: {}]   ;;  %s3177_s3 = inlined_call_operand.hbm [shape: bf16[128,1024], index: 3, kind: input, shape index: {}]   ;;  %s3178_s4 = inlined_call_operand.vmem [shape: f32[1,1024], index: 4, kind: input, shape index: {}]   ;;  %s3179_s5 = inlined_call_operand.hbm [shape: bf16[1024,128], index: 5, kind: input, shape index: {}]   ;;  %s3180_s6 = inlined_call_operand.vmem [shape: f32[1,128], index: 6, kind: input, shape index: {}]   ;;  %s3181_s7 = inlined_call_operand.hbm [shape: f32[16,128], index: 7, kind: output, shape index: {}]  }
   0x1   :  { %13 = vsyncpa [#allocation6], 0 }
   0x2   :  { %14 = vsyncpa [#allocation9], 0 }
   0x3   :  { %15 = vsyncpa [#allocation4], 0  ;;  %s2983_s24 = smov [#allocation5]   ;;  %s2843_s28 = scalar_lea.hbm %s3175_s1, 128 }
   0x4   :  { %s33_s25 = sshll.u32 %s2983_s24, 4  ;;  %p2844_p0 = scmp.ne.s32.totalorder %s3175_s1, %s2843_s28  ;;  %s34_s25 = int_to_ptr.vmem [resolvable:$true] %s33_s25 }
   0x5   :  { %p2847_p1 = scmp.lt.u32.totalorder %s2843_s28, %s3175_s1 }
   0x7   :  { %p2849_p2 = pnand %p2847_p1, %p2844_p0 }
   0x9   :  { %2852 = shalt.err (!%p2849_p2)
}
   0xa   :  { %s2853_s10 = scalar_lea.vmem %s34_s25, 128  ;;  %p2858_p4 = scmp.lt.s32.totalorder %s34_s25, %s34_s25 }
   0xb   :  { %p2854_p3 = scmp.ne.s32.totalorder %s34_s25, %s2853_s10  ;;  %p2859_p5 = scmp.lt.s32.totalorder %s2853_s10, %s2853_s10 }
   0xd   :  { %p2860_p6 = por %p2859_p5, %p2858_p4 }
   0xf   :  { %p2861_p7 = pnand %p2860_p6, %p2854_p3 }
  0x11   :  { %2864 = shalt.err (!%p2861_p7)
}
  0x12   :  { %s2984_s11 = smov 64   ;;  %s2985_s12 = smov 4  }
  0x13   :  { %39 = dma.hbm_to_vmem [thread:$0]  %s3175_s1, 128, %s34_s25, [#allocation6], %s2984_s11, %s2984_s11, %s2985_s12  }
  0x14   :  { %s2986_s15 = smov [#allocation8]   ;;  %s2987_s17 = smov [#allocation2]  }
  0x15   :  { %s57_s16 = sshll.u32 %s2986_s15, 4  ;;  %s21_s18 = sshll.u32 %s2987_s17, 4  ;;  %s58_s16 = int_to_ptr.vmem [resolvable:$true] %s57_s16  ;;  %s22_s18 = int_to_ptr.vmem [resolvable:$true] %s21_s18 }
  0x16   :  { %s2865_s21 = scalar_lea.hbm %s3177_s3, 8192 }
  0x17   :  { %p2866_p8 = scmp.ne.s32.totalorder %s3177_s3, %s2865_s21  ;;  %p2869_p9 = scmp.lt.u32.totalorder %s2865_s21, %s3177_s3 }
  0x19   :  { %p2871_p10 = pnand %p2869_p9, %p2866_p8 }
  0x1b   :  { %2874 = shalt.err (!%p2871_p10)
}
  0x1c   :  { %s2875_s1 = scalar_lea.vmem %s58_s16, 8192  ;;  %p2880_p12 = scmp.lt.s32.totalorder %s58_s16, %s58_s16 }
  0x1d   :  { %p2876_p11 = scmp.ne.s32.totalorder %s58_s16, %s2875_s1  ;;  %p2881_p13 = scmp.lt.s32.totalorder %s2875_s1, %s2875_s1 }
  0x1f   :  { %p2882_p0 = por %p2881_p13, %p2880_p12 }
  0x21   :  { %p2883_p1 = pnand %p2882_p0, %p2876_p11 }
  0x23   :  { %2886 = shalt.err (!%p2883_p1)
}
  0x24   :  { %s2988_s25 = smov 512   ;;  %s2989_s27 = smov 32  }
  0x25   :  { %63 = dma.hbm_to_vmem [thread:$0]  %s3177_s3, 8192, %s58_s16, [#allocation9], %s2988_s25, %s2988_s25, %s2989_s27  }
  0x26   :  { %s2887_s9 = scalar_lea.hbm %s3174_s0, 256 }
  0x27   :  { %p2888_p2 = scmp.ne.s32.totalorder %s3174_s0, %s2887_s9  ;;  %p2891_p3 = scmp.lt.u32.totalorder %s2887_s9, %s3174_s0 }
  0x29   :  { %p2893_p4 = pnand %p2891_p3, %p2888_p2 }
  0x2b   :  { %2896 = shalt.err (!%p2893_p4)
}
  0x2c   :  { %s2897_s17 = scalar_lea.vmem %s22_s18, 256  ;;  %p2902_p6 = scmp.lt.s32.totalorder %s22_s18, %s22_s18 }
  0x2d   :  { %p2898_p5 = scmp.ne.s32.totalorder %s22_s18, %s2897_s17  ;;  %p2903_p7 = scmp.lt.s32.totalorder %s2897_s17, %s2897_s17 }
  0x2f   :  { %p2904_p8 = por %p2903_p7, %p2902_p6 }
  0x31   :  { %p2905_p9 = pnand %p2904_p8, %p2898_p5 }
  0x33   :  { %2908 = shalt.err (!%p2905_p9)
}
  0x34   :  { %s2990_s3 = smov 128   ;;  %s2991_s16 = smov 8  }
  0x35   :  { %27 = dma.hbm_to_vmem [thread:$0]  %s3174_s0, 256, %s22_s18, [#allocation3], %s2990_s3, %s2990_s3, %s2991_s16  }
  0x36   :  { %s2992_s21 = smov [#allocation7]   ;;  %s2993_s23 = smov [#allocation10]  }
  0x37   :  { %s45_s22 = sshll.u32 %s2992_s21, 4  ;;  %s71_s24 = sshll.u32 %s2993_s23, 4  ;;  %s46_s22 = int_to_ptr.vmem [resolvable:$true] %s45_s22  ;;  %s72_s24 = int_to_ptr.vmem [resolvable:$true] %s71_s24 }
  0x38   :  { %s2909_s28 = scalar_lea.hbm %s3176_s2, 16384 }
  0x39   :  { %p2910_p10 = scmp.ne.s32.totalorder %s3176_s2, %s2909_s28  ;;  %p2913_p11 = scmp.lt.u32.totalorder %s2909_s28, %s3176_s2 }
  0x3b   :  { %p2915_p12 = pnand %p2913_p11, %p2910_p10 }
  0x3d   :  { %2918 = shalt.err (!%p2915_p12)
}
  0x3e   :  { %s2919_s0 = scalar_lea.vmem %s46_s22, 16384  ;;  %p2924_p0 = scmp.lt.s32.totalorder %s46_s22, %s46_s22 }
  0x3f   :  { %p2920_p13 = scmp.ne.s32.totalorder %s46_s22, %s2919_s0  ;;  %p2925_p1 = scmp.lt.s32.totalorder %s2919_s0, %s2919_s0 }
  0x41   :  { %p2926_p2 = por %p2925_p1, %p2924_p0 }
  0x43   :  { %p2927_p3 = pnand %p2926_p2, %p2920_p13 }
  0x45   :  { %2930 = shalt.err (!%p2927_p3)
}
  0x46   :  { %51 = dma.hbm_to_vmem [thread:$0]  %s3176_s2, 16384, %s46_s22, [#allocation6], %s2988_s25, %s2988_s25, %s2989_s27  }
  0x47   :  { %s2931_s15 = scalar_lea.hbm %s3179_s5, 8192 }
  0x48   :  { %p2932_p4 = scmp.ne.s32.totalorder %s3179_s5, %s2931_s15  ;;  %p2935_p5 = scmp.lt.u32.totalorder %s2931_s15, %s3179_s5 }
  0x4a   :  { %p2937_p6 = pnand %p2935_p5, %p2932_p4 }
  0x4c   :  { %2940 = shalt.err (!%p2937_p6)
}
  0x4d   :  { %s2941_s23 = scalar_lea.vmem %s72_s24, 8192  ;;  %p2946_p8 = scmp.lt.s32.totalorder %s72_s24, %s72_s24 }
  0x4e   :  { %p2942_p7 = scmp.ne.s32.totalorder %s72_s24, %s2941_s23  ;;  %p2947_p9 = scmp.lt.s32.totalorder %s2941_s23, %s2941_s23 }
  0x50   :  { %p2948_p10 = por %p2947_p9, %p2946_p8 }
  0x52   :  { %p2949_p11 = pnand %p2948_p10, %p2942_p7 }
  0x54   :  { %2952 = shalt.err (!%p2949_p11)
}
  0x55   :  { %77 = dma.hbm_to_vmem [thread:$0]  %s3179_s5, 8192, %s72_s24, [#allocation9], %s2984_s11, %s2984_s11, %s2985_s12  }
  0x56   :  { %2975 = dma.done.wait [#allocation3], 256  }
  0x57   :  { %2976 = vsyncadd [#allocation3], 4294967040 }
  0x58   :  { %2977 = dma.done.wait [#allocation6], 16512  }
  0x59   :  { %2978 = vsyncadd [#allocation6], 4294950784 }
  0x5a   :  { %2979 = dma.done.wait [#allocation9], 16384  }
  0x5b   :  { %2980 = vsyncadd [#allocation9], 4294950912  ;;  %v2994_v0 = vmov 0   ;;  %v228_v1 = vld [vmem:[#allocation8] sm:$0xff]  ;;  %v229_v3 = vld [vmem:[#allocation8 + $0x8] sm:$0xff] }
  0x5c   :  { %650 = vmatprep.mubr.bf16.mxu0 %v2994_v0  ;;  %693 = vmatprep.mubr.bf16.mxu1 %v2994_v0  ;;  %v232_v2 = vld [vmem:[#allocation8 + $0x20] sm:$0xff]  ;;  %v233_v5 = vld [vmem:[#allocation8 + $0x28] sm:$0xff]  ;;  %v230_v63 = vld [vmem:[#allocation8 + $0x10] sm:$0xff] }
  0x5d   :  { %v2400_v4 = vcombine.high %v228_v1, %v232_v2  ;;  %v2399_v6 = vcombine.low %v228_v1, %v232_v2  ;;  %v236_v7 = vld [vmem:[#allocation8 + $0x40] sm:$0xff]  ;;  %v2402_v9 = vcombine.high %v229_v3, %v233_v5  ;;  %v2401_v10 = vcombine.low %v229_v3, %v233_v5  ;;  %v237_v12 = vld [vmem:[#allocation8 + $0x48] sm:$0xff]  ;;  %v234_v1 = vld [vmem:[#allocation8 + $0x30] sm:$0xff] }
  0x5e   :  { %v240_v8 = vld [vmem:[#allocation8 + $0x60] sm:$0xff]  ;;  %v241_v13 = vld [vmem:[#allocation8 + $0x68] sm:$0xff]  ;;  %v231_v2 = vld [vmem:[#allocation8 + $0x18] sm:$0xff] }
  0x5f   :  { %v2408_v11 = vcombine.high %v236_v7, %v240_v8  ;;  %v244_v14 = vld [vmem:[#allocation8 + $0x80] sm:$0xff]  ;;  %618 = vmatprep.subr.bf16.mxu0 %v2400_v4  ;;  %v2410_v15 = vcombine.high %v237_v12, %v241_v13  ;;  %v245_v17 = vld [vmem:[#allocation8 + $0x88] sm:$0xff]  ;;  %661 = vmatprep.subr.bf16.mxu1 %v2402_v9  ;;  %v2407_v19 = vcombine.low %v236_v7, %v240_v8  ;;  %v235_v3 = vld [vmem:[#allocation8 + $0x38] sm:$0xff] }
  0x60   :  { %v248_v16 = vld [vmem:[#allocation8 + $0xa0] sm:$0xff]  ;;  %v249_v18 = vld [vmem:[#allocation8 + $0xa8] sm:$0xff]  ;;  %619 = vmatpush1.bf16.msra.mxu0 %v2399_v6  ;;  %662 = vmatpush1.bf16.msra.mxu1 %v2401_v10  ;;  %v2409_v20 = vcombine.low %v237_v12, %v241_v13  ;;  %v2404_v6 = vcombine.high %v230_v63, %v234_v1  ;;  %v2406_v7 = vcombine.high %v231_v2, %v235_v3  ;;  %v238_v8 = vld [vmem:[#allocation8 + $0x50] sm:$0xff] }
  0x61   :  { %620 = vmatprep.subr.bf16.mxu0 %v2408_v11  ;;  %v2416_v21 = vcombine.high %v244_v14, %v248_v16  ;;  %663 = vmatprep.subr.bf16.mxu1 %v2410_v15  ;;  %v2418_v22 = vcombine.high %v245_v17, %v249_v18  ;;  %v252_v23 = vld [vmem:[#allocation8 + $0xc0] sm:$0xff]  ;;  %v253_v25 = vld [vmem:[#allocation8 + $0xc8] sm:$0xff]  ;;  %v2415_v27 = vcombine.low %v244_v14, %v248_v16  ;;  %v242_v9 = vld [vmem:[#allocation8 + $0x70] sm:$0xff] }
  0x62   :  { %v256_v24 = vld [vmem:[#allocation8 + $0xe0] sm:$0xff]  ;;  %v257_v26 = vld [vmem:[#allocation8 + $0xe8] sm:$0xff]  ;;  %v2417_v28 = vcombine.low %v245_v17, %v249_v18  ;;  %v3113_v10 = vld [vmem:[#allocation5] sm:$0xff]   ;;  %v2403_v13 = vcombine.low %v230_v63, %v234_v1  ;;  %v2405_v14 = vcombine.low %v231_v2, %v235_v3  ;;  %v2412_v15 = vcombine.high %v238_v8, %v242_v9 }
  0x63   :  { %v2424_v29 = vcombine.high %v252_v23, %v256_v24  ;;  %v2426_v30 = vcombine.high %v253_v25, %v257_v26  ;;  %v260_v31 = vld [vmem:[#allocation8 + $0x100] sm:$0xff]  ;;  %v261_v33 = vld [vmem:[#allocation8 + $0x108] sm:$0xff]  ;;  %v2423_v35 = vcombine.low %v252_v23, %v256_v24  ;;  %v2425_v36 = vcombine.low %v253_v25, %v257_v26  ;;  %v239_v11 = vld [vmem:[#allocation8 + $0x58] sm:$0xff] }
  0x64   :  { %621 = vmatpush1.bf16.msra.mxu0 %v2407_v19  ;;  %664 = vmatpush1.bf16.msra.mxu1 %v2409_v20  ;;  %v264_v32 = vld [vmem:[#allocation8 + $0x120] sm:$0xff]  ;;  %v265_v34 = vld [vmem:[#allocation8 + $0x128] sm:$0xff]  ;;  %v243_v12 = vld [vmem:[#allocation8 + $0x78] sm:$0xff] }
  0x65   :  { %622 = vmatprep.subr.bf16.mxu0 %v2416_v21  ;;  %665 = vmatprep.subr.bf16.mxu1 %v2418_v22  ;;  %v2432_v37 = vcombine.high %v260_v31, %v264_v32  ;;  %v2434_v38 = vcombine.high %v261_v33, %v265_v34  ;;  %v268_v39 = vld [vmem:[#allocation8 + $0x140] sm:$0xff]  ;;  %v269_v41 = vld [vmem:[#allocation8 + $0x148] sm:$0xff]  ;;  %v2431_v43 = vcombine.low %v260_v31, %v264_v32  ;;  %v246_v17 = vld [vmem:[#allocation8 + $0x90] sm:$0xff] }
  0x66   :  { %v272_v40 = vld [vmem:[#allocation8 + $0x160] sm:$0xff]  ;;  %v273_v42 = vld [vmem:[#allocation8 + $0x168] sm:$0xff]  ;;  %v2433_v44 = vcombine.low %v261_v33, %v265_v34  ;;  %v2414_v16 = vcombine.high %v239_v11, %v243_v12  ;;  %v250_v18 = vld [vmem:[#allocation8 + $0xb0] sm:$0xff]  ;;  %v2411_v21 = vcombine.low %v238_v8, %v242_v9  ;;  %v2413_v22 = vcombine.low %v239_v11, %v243_v12 }
  0x67   :  { %v2440_v45 = vcombine.high %v268_v39, %v272_v40  ;;  %v2442_v46 = vcombine.high %v269_v41, %v273_v42  ;;  %v276_v47 = vld [vmem:[#allocation8 + $0x180] sm:$0xff]  ;;  %v277_v49 = vld [vmem:[#allocation8 + $0x188] sm:$0xff]  ;;  %v2439_v51 = vcombine.low %v268_v39, %v272_v40  ;;  %v2441_v52 = vcombine.low %v269_v41, %v273_v42  ;;  %v247_v19 = vld [vmem:[#allocation8 + $0x98] sm:$0xff] }
  0x68   :  { %623 = vmatpush1.bf16.msra.mxu0 %v2415_v27  ;;  %666 = vmatpush1.bf16.msra.mxu1 %v2417_v28  ;;  %v280_v48 = vld [vmem:[#allocation8 + $0x1a0] sm:$0xff]  ;;  %v281_v50 = vld [vmem:[#allocation8 + $0x1a8] sm:$0xff]  ;;  %v251_v20 = vld [vmem:[#allocation8 + $0xb8] sm:$0xff]  ;;  %v2420_v23 = vcombine.high %v246_v17, %v250_v18 }
  0x69   :  { %624 = vmatprep.subr.bf16.mxu0 %v2424_v29  ;;  %667 = vmatprep.subr.bf16.mxu1 %v2426_v30  ;;  %v2448_v53 = vcombine.high %v276_v47, %v280_v48  ;;  %v2450_v54 = vcombine.high %v277_v49, %v281_v50  ;;  %v284_v55 = vld [vmem:[#allocation8 + $0x1c0] sm:$0xff]  ;;  %v285_v57 = vld [vmem:[#allocation8 + $0x1c8] sm:$0xff]  ;;  %v2447_v59 = vcombine.low %v276_v47, %v280_v48  ;;  %v254_v25 = vld [vmem:[#allocation8 + $0xd0] sm:$0xff] }
  0x6a   :  { %v288_v56 = vld [vmem:[#allocation8 + $0x1e0] sm:$0xff]  ;;  %v289_v58 = vld [vmem:[#allocation8 + $0x1e8] sm:$0xff]  ;;  %v2449_v60 = vcombine.low %v277_v49, %v281_v50  ;;  %v2422_v24 = vcombine.high %v247_v19, %v251_v20  ;;  %v258_v26 = vld [vmem:[#allocation8 + $0xf0] sm:$0xff]  ;;  %v2419_v29 = vcombine.low %v246_v17, %v250_v18  ;;  %v2421_v30 = vcombine.low %v247_v19, %v251_v20 }
  0x6b   :  { %v2456_v61 = vcombine.high %v284_v55, %v288_v56  ;;  %v2458_v62 = vcombine.high %v285_v57, %v289_v58  ;;  %v2455_v4 = vcombine.low %v284_v55, %v288_v56  ;;  %v2457_v5 = vcombine.low %v285_v57, %v289_v58  ;;  %v255_v27 = vld [vmem:[#allocation8 + $0xd8] sm:$0xff]  ;;  %v262_v33 = vld [vmem:[#allocation8 + $0x110] sm:$0xff]  ;;  %v98_v1 = vld [vmem:[#allocation7] sm:$0xff] }
  0x6c   :  { %625 = vmatpush1.bf16.msra.mxu0 %v2423_v35  ;;  %668 = vmatpush1.bf16.msra.mxu1 %v2425_v36  ;;  %v259_v28 = vld [vmem:[#allocation8 + $0xf8] sm:$0xff]  ;;  %v2428_v31 = vcombine.high %v254_v25, %v258_v26  ;;  %v266_v34 = vld [vmem:[#allocation8 + $0x130] sm:$0xff]  ;;  %v102_v2 = vld [vmem:[#allocation7 + $0x20] sm:$0xff] }
  0x6d   :  { %626 = vmatprep.subr.bf16.mxu0 %v2432_v37  ;;  %669 = vmatprep.subr.bf16.mxu1 %v2434_v38  ;;  %v2430_v32 = vcombine.high %v255_v27, %v259_v28  ;;  %v263_v35 = vld [vmem:[#allocation8 + $0x118] sm:$0xff]  ;;  %v2427_v37 = vcombine.low %v254_v25, %v258_v26  ;;  %v2429_v38 = vcombine.low %v255_v27, %v259_v28  ;;  %v270_v40 = vld [vmem:[#allocation8 + $0x150] sm:$0xff]  ;;  %v99_v3 = vld [vmem:[#allocation7 + $0x8] sm:$0xff] }
  0x6e   :  { %v267_v36 = vld [vmem:[#allocation8 + $0x138] sm:$0xff]  ;;  %v2436_v39 = vcombine.high %v262_v33, %v266_v34  ;;  %v274_v41 = vld [vmem:[#allocation8 + $0x170] sm:$0xff]  ;;  %v106_v9 = vld [vmem:[#allocation7 + $0x40] sm:$0xff] }
  0x6f   :  { %v271_v42 = vld [vmem:[#allocation8 + $0x158] sm:$0xff]  ;;  %v278_v48 = vld [vmem:[#allocation8 + $0x190] sm:$0xff]  ;;  %v110_v11 = vld [vmem:[#allocation7 + $0x60] sm:$0xff] }
  0x70   :  { %627 = vmatpush1.bf16.msra.mxu0 %v2431_v43  ;;  %670 = vmatpush1.bf16.msra.mxu1 %v2433_v44  ;;  %v275_v43 = vld [vmem:[#allocation8 + $0x178] sm:$0xff]  ;;  %v2435_v44 = vcombine.low %v262_v33, %v266_v34  ;;  %v282_v49 = vld [vmem:[#allocation8 + $0x1b0] sm:$0xff]  ;;  %v107_v12 = vld [vmem:[#allocation7 + $0x48] sm:$0xff]  ;;  %v2474_v17 = vcombine.high %v106_v9, %v110_v11 }
  0x71   :  { %628 = vmatprep.subr.bf16.mxu0 %v2440_v45  ;;  %671 = vmatprep.subr.bf16.mxu1 %v2442_v46  ;;  %v2437_v45 = vcombine.low %v263_v35, %v267_v36  ;;  %v2444_v46 = vcombine.high %v270_v40, %v274_v41  ;;  %v2446_v47 = vcombine.high %v271_v42, %v275_v43  ;;  %v279_v50 = vld [vmem:[#allocation8 + $0x198] sm:$0xff]  ;;  %v286_v56 = vld [vmem:[#allocation8 + $0x1d0] sm:$0xff]  ;;  %v118_v18 = vld [vmem:[#allocation7 + $0xa0] sm:$0xff] }
  0x72   :  { %v290_v57 = vld [vmem:[#allocation8 + $0x1f0] sm:$0xff]  ;;  %v287_v58 = vld [vmem:[#allocation8 + $0x1d8] sm:$0xff]  ;;  %v115_v19 = vld [vmem:[#allocation7 + $0x88] sm:$0xff] }
  0x73   :  { %v119_v20 = vld [vmem:[#allocation7 + $0xa8] sm:$0xff]  ;;  %v126_v27 = vld [vmem:[#allocation7 + $0xe0] sm:$0xff] }
  0x74   :  { %629 = vmatpush1.bf16.msra.mxu0 %v2439_v51  ;;  %672 = vmatpush1.bf16.msra.mxu1 %v2441_v52  ;;  %v283_v51 = vld [vmem:[#allocation8 + $0x1b8] sm:$0xff]  ;;  %v2443_v52 = vcombine.low %v270_v40, %v274_v41  ;;  %v2484_v28 = vcombine.high %v115_v19, %v119_v20  ;;  %v134_v34 = vld [vmem:[#allocation7 + $0x120] sm:$0xff] }
  0x75   :  { %630 = vmatprep.subr.bf16.mxu0 %v2448_v53  ;;  %673 = vmatprep.subr.bf16.mxu1 %v2450_v54  ;;  %v2445_v53 = vcombine.low %v271_v42, %v275_v43  ;;  %v2452_v54 = vcombine.high %v278_v48, %v282_v49  ;;  %v2454_v55 = vcombine.high %v279_v50, %v283_v51  ;;  %v142_v41 = vld [vmem:[#allocation7 + $0x160] sm:$0xff]  ;;  %v139_v43 = vld [vmem:[#allocation7 + $0x148] sm:$0xff] }
  0x78   :  { %631 = vmatpush1.bf16.msra.mxu0 %v2447_v59  ;;  %674 = vmatpush1.bf16.msra.mxu1 %v2449_v60  ;;  %v291_v59 = vld [vmem:[#allocation8 + $0x1f8] sm:$0xff]  ;;  %v2451_v60 = vcombine.low %v278_v48, %v282_v49  ;;  %v150_v49 = vld [vmem:[#allocation7 + $0x1a0] sm:$0xff] }
  0x79   :  { %632 = vmatprep.subr.bf16.mxu0 %v2456_v61  ;;  %675 = vmatprep.subr.bf16.mxu1 %v2458_v62  ;;  %v2453_v61 = vcombine.low %v279_v50, %v283_v51  ;;  %v2460_v62 = vcombine.high %v286_v56, %v290_v57  ;;  %v2462_v63 = vcombine.high %v287_v58, %v291_v59  ;;  %v147_v51 = vld [vmem:[#allocation7 + $0x188] sm:$0xff] }
  0x7c   :  { %633 = vmatpush1.bf16.msra.mxu0 %v2455_v4  ;;  %676 = vmatpush1.bf16.msra.mxu1 %v2457_v5  ;;  %v103_v4 = vld [vmem:[#allocation7 + $0x28] sm:$0xff]  ;;  %v2459_v5 = vcombine.low %v286_v56, %v290_v57  ;;  %v158_v57 = vld [vmem:[#allocation7 + $0x1e0] sm:$0xff] }
  0x7d   :  { %704 = vmatprep.subr.bf16.mxu0 %v2404_v6  ;;  %747 = vmatprep.subr.bf16.mxu1 %v2406_v7  ;;  %v2461_v6 = vcombine.low %v287_v58, %v291_v59  ;;  %v2466_v7 = vcombine.high %v98_v1, %v102_v2  ;;  %v2468_v8 = vcombine.high %v99_v3, %v103_v4  ;;  %v155_v59 = vld [vmem:[#allocation7 + $0x1c8] sm:$0xff] }
  0x7f   :  { %651 = vmatmul.mubr.bf16.vlgmr.msra.gmra.mrb[0].mxu0 %v3113_v10  ;;  %694 = vmatmul.mubr.bf16.vlgmr.msra.gmra.mrb[0].mxu1 %v3113_v10 }
  0x80   :  { %705 = vmatpush1.bf16.msra.mxu0 %v2403_v13  ;;  %748 = vmatpush1.bf16.msra.mxu1 %v2405_v14  ;;  %v111_v13 = vld [vmem:[#allocation7 + $0x68] sm:$0xff]  ;;  %v2465_v14 = vcombine.low %v98_v1, %v102_v2 }
  0x81   :  { %706 = vmatprep.subr.bf16.mxu0 %v2412_v15  ;;  %749 = vmatprep.subr.bf16.mxu1 %v2414_v16  ;;  %v114_v15 = vld [vmem:[#allocation7 + $0x80] sm:$0xff]  ;;  %v2467_v16 = vcombine.low %v99_v3, %v103_v4  ;;  %v2475_v25 = vcombine.low %v107_v12, %v111_v13  ;;  %v163_v3 = vld [vmem:[#allocation7 + $0x208] sm:$0xff] }
  0x82   :  { %736 = vmatprep.mubr.bf16.mxu0 %v2994_v0  ;;  %779 = vmatprep.mubr.bf16.mxu1 %v2994_v0  ;;  %v2438_v0 = vcombine.high %v263_v35, %v267_v36  ;;  %v2482_v26 = vcombine.high %v114_v15, %v118_v18  ;;  %v131_v36 = vld [vmem:[#allocation7 + $0x108] sm:$0xff] }
  0x83   :  { %v167_v4 = vld [vmem:[#allocation7 + $0x228] sm:$0xff] }
  0x84   :  { %707 = vmatpush1.bf16.msra.mxu0 %v2411_v21  ;;  %750 = vmatpush1.bf16.msra.mxu1 %v2413_v22  ;;  %v2476_v21 = vcombine.high %v107_v12, %v111_v13  ;;  %v3119_v22 = vld [vmem:[#allocation2 + $0x4] ss:$8 sps:$4 sm:$0xff]  }
  0x85   :  { %708 = vmatprep.subr.bf16.mxu0 %v2420_v23  ;;  %751 = vmatprep.subr.bf16.mxu1 %v2422_v24  ;;  %v2473_v23 = vcombine.low %v106_v9, %v110_v11  ;;  %v122_v24 = vld [vmem:[#allocation7 + $0xc0] sm:$0xff]  ;;  %v171_v12 = vld [vmem:[#allocation7 + $0x248] sm:$0xff] }
  0x86   :  { %v2490_v33 = vcombine.high %v122_v24, %v126_v27  ;;  %v175_v13 = vld [vmem:[#allocation7 + $0x268] sm:$0xff] }
  0x88   :  { %709 = vmatpush1.bf16.msra.mxu0 %v2419_v29  ;;  %752 = vmatpush1.bf16.msra.mxu1 %v2421_v30  ;;  %v123_v29 = vld [vmem:[#allocation7 + $0xc8] sm:$0xff] }
  0x89   :  { %710 = vmatprep.subr.bf16.mxu0 %v2428_v31  ;;  %753 = vmatprep.subr.bf16.mxu1 %v2430_v32  ;;  %v127_v30 = vld [vmem:[#allocation7 + $0xe8] sm:$0xff]  ;;  %v2481_v31 = vcombine.low %v114_v15, %v118_v18  ;;  %v130_v32 = vld [vmem:[#allocation7 + $0x100] sm:$0xff]  ;;  %v2531_v18 = vcombine.low %v163_v3, %v167_v4 }
  0x8a   :  { %v2492_v35 = vcombine.high %v123_v29, %v127_v30  ;;  %v2498_v40 = vcombine.high %v130_v32, %v134_v34 }
  0x8c   :  { %711 = vmatpush1.bf16.msra.mxu0 %v2427_v37  ;;  %754 = vmatpush1.bf16.msra.mxu1 %v2429_v38  ;;  %v135_v37 = vld [vmem:[#allocation7 + $0x128] sm:$0xff]  ;;  %v2489_v38 = vcombine.low %v122_v24, %v126_v27  ;;  %v2539_v27 = vcombine.low %v171_v12, %v175_v13 }
  0x8d   :  { %712 = vmatprep.subr.bf16.mxu0 %v2436_v39  ;;  %755 = vmatprep.subr.bf16.mxu1 %v2438_v0  ;;  %v138_v39 = vld [vmem:[#allocation7 + $0x140] sm:$0xff]  ;;  %v2491_v0 = vcombine.low %v123_v29, %v127_v30  ;;  %v2500_v42 = vcombine.high %v131_v36, %v135_v37  ;;  %v187_v29 = vld [vmem:[#allocation7 + $0x2c8] sm:$0xff] }
  0x8e   :  { %v2506_v48 = vcombine.high %v138_v39, %v142_v41  ;;  %v191_v30 = vld [vmem:[#allocation7 + $0x2e8] sm:$0xff] }
  0x90   :  { %713 = vmatpush1.bf16.msra.mxu0 %v2435_v44  ;;  %756 = vmatpush1.bf16.msra.mxu1 %v2437_v45  ;;  %v143_v44 = vld [vmem:[#allocation7 + $0x168] sm:$0xff]  ;;  %v2497_v45 = vcombine.low %v130_v32, %v134_v34 }
  0x91   :  { %714 = vmatprep.subr.bf16.mxu0 %v2444_v46  ;;  %757 = vmatprep.subr.bf16.mxu1 %v2446_v47  ;;  %v146_v46 = vld [vmem:[#allocation7 + $0x180] sm:$0xff]  ;;  %v2499_v47 = vcombine.low %v131_v36, %v135_v37  ;;  %v2508_v50 = vcombine.high %v139_v43, %v143_v44  ;;  %v195_v36 = vld [vmem:[#allocation7 + $0x308] sm:$0xff] }
  0x92   :  { %v2514_v56 = vcombine.high %v146_v46, %v150_v49  ;;  %v199_v37 = vld [vmem:[#allocation7 + $0x328] sm:$0xff] }
  0x94   :  { %715 = vmatpush1.bf16.msra.mxu0 %v2443_v52  ;;  %758 = vmatpush1.bf16.msra.mxu1 %v2445_v53  ;;  %v151_v52 = vld [vmem:[#allocation7 + $0x1a8] sm:$0xff]  ;;  %v2505_v53 = vcombine.low %v138_v39, %v142_v41  ;;  %v2555_v41 = vcombine.low %v187_v29, %v191_v30 }
  0x95   :  { %716 = vmatprep.subr.bf16.mxu0 %v2452_v54  ;;  %759 = vmatprep.subr.bf16.mxu1 %v2454_v55  ;;  %v154_v54 = vld [vmem:[#allocation7 + $0x1c0] sm:$0xff]  ;;  %v2507_v55 = vcombine.low %v139_v43, %v143_v44  ;;  %v2516_v58 = vcombine.high %v147_v51, %v151_v52  ;;  %v2515_v1 = vcombine.low %v147_v51, %v151_v52  ;;  %v203_v43 = vld [vmem:[#allocation7 + $0x348] sm:$0xff] }
  0x96   :  { %v2522_v2 = vcombine.high %v154_v54, %v158_v57  ;;  %v207_v44 = vld [vmem:[#allocation7 + $0x368] sm:$0xff] }
  0x97   :  { %v211_v51 = vld [vmem:[#allocation7 + $0x388] sm:$0xff] }
  0x98   :  { %717 = vmatpush1.bf16.msra.mxu0 %v2451_v60  ;;  %760 = vmatpush1.bf16.msra.mxu1 %v2453_v61  ;;  %v159_v60 = vld [vmem:[#allocation7 + $0x1e8] sm:$0xff]  ;;  %v2513_v61 = vcombine.low %v146_v46, %v150_v49  ;;  %v2563_v49 = vcombine.low %v195_v36, %v199_v37 }
  0x99   :  { %718 = vmatprep.subr.bf16.mxu0 %v2460_v62  ;;  %761 = vmatprep.subr.bf16.mxu1 %v2462_v63  ;;  %v162_v62 = vld [vmem:[#allocation7 + $0x200] sm:$0xff]  ;;  %v2523_v9 = vcombine.low %v155_v59, %v159_v60  ;;  %v215_v52 = vld [vmem:[#allocation7 + $0x3a8] sm:$0xff] }
  0x9a   :  { %v166_v63 = vld [vmem:[#allocation7 + $0x220] sm:$0xff] }
  0x9b   :  { %v2530_v11 = vcombine.high %v162_v62, %v166_v63  ;;  %v2529_v15 = vcombine.low %v162_v62, %v166_v63  ;;  %v2579_v63 = vcombine.low %v211_v51, %v215_v52 }
  0x9c   :  { %719 = vmatpush1.bf16.msra.mxu0 %v2459_v5  ;;  %762 = vmatpush1.bf16.msra.mxu1 %v2461_v6  ;;  %v2524_v5 = vcombine.high %v155_v59, %v159_v60  ;;  %v2521_v6 = vcombine.low %v154_v54, %v158_v57  ;;  %v2580_v57 = vcombine.high %v211_v51, %v215_v52  ;;  %v222_v59 = vld [vmem:[#allocation7 + $0x3e0] sm:$0xff]  ;;  %v219_v60 = vld [vmem:[#allocation7 + $0x3c8] sm:$0xff]  ;;  %v148_v51 = vld [vmem:[#allocation7 + $0x190] sm:$0xff] }
  0x9d   :  { %1440 = vmatprep.subr.bf16.mxu0 %v2466_v7  ;;  %1483 = vmatprep.subr.bf16.mxu1 %v2468_v8  ;;  %v170_v7 = vld [vmem:[#allocation7 + $0x240] sm:$0xff]  ;;  %v152_v52 = vld [vmem:[#allocation7 + $0x1b0] sm:$0xff] }
  0x9e   :  { %v174_v8 = vld [vmem:[#allocation7 + $0x260] sm:$0xff] }
  0x9f   :  { %737 = vmatmul.mubr.bf16.vlgmr.msra.gmra.mrb[4].mxu0 %v3113_v10  ;;  %780 = vmatmul.mubr.bf16.vlgmr.msra.gmra.mrb[4].mxu1 %v3113_v10  ;;  %v2483_v10 = vcombine.low %v115_v19, %v119_v20  ;;  %v2538_v19 = vcombine.high %v170_v7, %v174_v8  ;;  %v179_v20 = vld [vmem:[#allocation7 + $0x288] sm:$0xff]  ;;  %v2537_v24 = vcombine.low %v170_v7, %v174_v8 }
  0xa0   :  { %1441 = vmatpush1.bf16.msra.mxu0 %v2465_v14  ;;  %1484 = vmatpush1.bf16.msra.mxu1 %v2467_v16  ;;  %v2532_v14 = vcombine.high %v163_v3, %v167_v4  ;;  %v178_v16 = vld [vmem:[#allocation7 + $0x280] sm:$0xff]  ;;  %v100_v3 = vld [vmem:[#allocation7 + $0x10] sm:$0xff] }
  0xa1   :  { %1442 = vmatprep.subr.bf16.mxu0 %v2474_v17  ;;  %1485 = vmatprep.subr.bf16.mxu1 %v2476_v21  ;;  %v182_v17 = vld [vmem:[#allocation7 + $0x2a0] sm:$0xff]  ;;  %v183_v21 = vld [vmem:[#allocation7 + $0x2a8] sm:$0xff]  ;;  %v104_v4 = vld [vmem:[#allocation7 + $0x30] sm:$0xff] }
  0xa2   :  { %1472 = vmatprep.mubr.bf16.mxu0 %v3119_v22  ;;  %1515 = vmatprep.mubr.bf16.mxu1 %v3119_v22  ;;  %v2545_v32 = vcombine.low %v178_v16, %v182_v17  ;;  %v2547_v34 = vcombine.low %v179_v20, %v183_v21 }
  0xa4   :  { %1443 = vmatpush1.bf16.msra.mxu0 %v2473_v23  ;;  %1486 = vmatpush1.bf16.msra.mxu1 %v2475_v25  ;;  %v2540_v23 = vcombine.high %v171_v12, %v175_v13  ;;  %v186_v25 = vld [vmem:[#allocation7 + $0x2c0] sm:$0xff]  ;;  %v108_v12 = vld [vmem:[#allocation7 + $0x50] sm:$0xff] }
  0xa5   :  { %1444 = vmatprep.subr.bf16.mxu0 %v2482_v26  ;;  %1487 = vmatprep.subr.bf16.mxu1 %v2484_v28  ;;  %v190_v26 = vld [vmem:[#allocation7 + $0x2e0] sm:$0xff]  ;;  %v2546_v28 = vcombine.high %v178_v16, %v182_v17  ;;  %v112_v13 = vld [vmem:[#allocation7 + $0x70] sm:$0xff]  ;;  %v113_v16 = vld [vmem:[#allocation7 + $0x78] sm:$0xff]  ;;  %v2469_v17 = vcombine.low %v100_v3, %v104_v4 }
  0xa6   :  { %v2553_v39 = vcombine.low %v186_v25, %v190_v26 }
  0xa8   :  { %1445 = vmatpush1.bf16.msra.mxu0 %v2481_v31  ;;  %1488 = vmatpush1.bf16.msra.mxu1 %v2483_v10  ;;  %v2548_v31 = vcombine.high %v179_v20, %v183_v21  ;;  %v194_v10 = vld [vmem:[#allocation7 + $0x300] sm:$0xff]  ;;  %v116_v21 = vld [vmem:[#allocation7 + $0x90] sm:$0xff] }
  0xa9   :  { %1446 = vmatprep.subr.bf16.mxu0 %v2490_v33  ;;  %1489 = vmatprep.subr.bf16.mxu1 %v2492_v35  ;;  %v198_v33 = vld [vmem:[#allocation7 + $0x320] sm:$0xff]  ;;  %v2554_v35 = vcombine.high %v186_v25, %v190_v26  ;;  %v121_v25 = vld [vmem:[#allocation7 + $0xb8] sm:$0xff]  ;;  %v2477_v26 = vcombine.low %v108_v12, %v112_v13 }
  0xaa   :  { %v2561_v46 = vcombine.low %v194_v10, %v198_v33 }
  0xac   :  { %1447 = vmatpush1.bf16.msra.mxu0 %v2489_v38  ;;  %1490 = vmatpush1.bf16.msra.mxu1 %v2491_v0  ;;  %v2556_v38 = vcombine.high %v187_v29, %v191_v30  ;;  %v202_v0 = vld [vmem:[#allocation7 + $0x340] sm:$0xff]  ;;  %v124_v30 = vld [vmem:[#allocation7 + $0xd0] sm:$0xff] }
  0xad   :  { %1448 = vmatprep.subr.bf16.mxu0 %v2498_v40  ;;  %1491 = vmatprep.subr.bf16.mxu1 %v2500_v42  ;;  %v206_v40 = vld [vmem:[#allocation7 + $0x360] sm:$0xff]  ;;  %v2562_v42 = vcombine.high %v194_v10, %v198_v33  ;;  %v129_v10 = vld [vmem:[#allocation7 + $0xf8] sm:$0xff] }
  0xae   :  { %v2569_v54 = vcombine.low %v202_v0, %v206_v40 }
  0xb0   :  { %1449 = vmatpush1.bf16.msra.mxu0 %v2497_v45  ;;  %1492 = vmatpush1.bf16.msra.mxu1 %v2499_v47  ;;  %v2564_v45 = vcombine.high %v195_v36, %v199_v37  ;;  %v210_v47 = vld [vmem:[#allocation7 + $0x380] sm:$0xff]  ;;  %v132_v37 = vld [vmem:[#allocation7 + $0x110] sm:$0xff] }
  0xb1   :  { %1450 = vmatprep.subr.bf16.mxu0 %v2506_v48  ;;  %1493 = vmatprep.subr.bf16.mxu1 %v2508_v50  ;;  %v214_v48 = vld [vmem:[#allocation7 + $0x3a0] sm:$0xff]  ;;  %v2570_v50 = vcombine.high %v202_v0, %v206_v40  ;;  %v137_v0 = vld [vmem:[#allocation7 + $0x138] sm:$0xff] }
  0xb2   :  { %v2577_v62 = vcombine.low %v210_v47, %v214_v48 }
  0xb4   :  { %1451 = vmatpush1.bf16.msra.mxu0 %v2505_v53  ;;  %1494 = vmatpush1.bf16.msra.mxu1 %v2507_v55  ;;  %v2572_v53 = vcombine.high %v203_v43, %v207_v44  ;;  %v2571_v55 = vcombine.low %v203_v43, %v207_v44  ;;  %v140_v43 = vld [vmem:[#allocation7 + $0x150] sm:$0xff] }
  0xb5   :  { %1452 = vmatprep.subr.bf16.mxu0 %v2514_v56  ;;  %1495 = vmatprep.subr.bf16.mxu1 %v2516_v58  ;;  %v2578_v56 = vcombine.high %v210_v47, %v214_v48  ;;  %v218_v58 = vld [vmem:[#allocation7 + $0x3c0] sm:$0xff]  ;;  %v144_v44 = vld [vmem:[#allocation7 + $0x170] sm:$0xff] }
  0xb6   :  { %v2585_v7 = vcombine.low %v218_v58, %v222_v59 }
  0xb8   :  { %1453 = vmatpush1.bf16.msra.mxu0 %v2513_v61  ;;  %1496 = vmatpush1.bf16.msra.mxu1 %v2515_v1  ;;  %v223_v61 = vld [vmem:[#allocation7 + $0x3e8] sm:$0xff]  ;;  %v2586_v1 = vcombine.high %v218_v58, %v222_v59  ;;  %v156_v59 = vld [vmem:[#allocation7 + $0x1d0] sm:$0xff] }
  0xb9   :  { %1454 = vmatprep.subr.bf16.mxu0 %v2522_v2  ;;  %1497 = vmatprep.subr.bf16.mxu1 %v2524_v5  ;;  %v2588_v2 = vcombine.high %v219_v60, %v223_v61  ;;  %v101_v5 = vld [vmem:[#allocation7 + $0x18] sm:$0xff]  ;;  %v2587_v8 = vcombine.low %v219_v60, %v223_v61  ;;  %v160_v60 = vld [vmem:[#allocation7 + $0x1f0] sm:$0xff] }
  0xba   :  { %v157_v61 = vld [vmem:[#allocation7 + $0x1d8] sm:$0xff] }
  0xbc   :  { %1455 = vmatpush1.bf16.msra.mxu0 %v2521_v6  ;;  %1498 = vmatpush1.bf16.msra.mxu1 %v2523_v9  ;;  %v105_v6 = vld [vmem:[#allocation7 + $0x38] sm:$0xff]  ;;  %v2470_v9 = vcombine.high %v100_v3, %v104_v4  ;;  %v164_v4 = vld [vmem:[#allocation7 + $0x210] sm:$0xff] }
  0xbd   :  { %1456 = vmatprep.subr.bf16.mxu0 %v2530_v11  ;;  %1499 = vmatprep.subr.bf16.mxu1 %v2532_v14  ;;  %v2472_v11 = vcombine.high %v101_v5, %v105_v6  ;;  %v3125_v14 = vld [vmem:[#allocation2] ss:$8 sps:$4 sm:$0xff]  }
  0xc0   :  { %1457 = vmatpush1.bf16.msra.mxu0 %v2529_v15  ;;  %1500 = vmatpush1.bf16.msra.mxu1 %v2531_v18  ;;  %v109_v15 = vld [vmem:[#allocation7 + $0x58] sm:$0xff]  ;;  %v2471_v18 = vcombine.low %v101_v5, %v105_v6  ;;  %v168_v5 = vld [vmem:[#allocation7 + $0x230] sm:$0xff] }
  0xc1   :  { %1458 = vmatprep.subr.bf16.mxu0 %v2538_v19  ;;  %1501 = vmatprep.subr.bf16.mxu1 %v2540_v23  ;;  %v2478_v19 = vcombine.high %v108_v12, %v112_v13  ;;  %v2480_v20 = vcombine.high %v109_v15, %v113_v16  ;;  %v120_v23 = vld [vmem:[#allocation7 + $0xb0] sm:$0xff]  ;;  %v165_v6 = vld [vmem:[#allocation7 + $0x218] sm:$0xff] }
  0xc2   :  { %v2485_v33 = vcombine.low %v116_v21, %v120_v23  ;;  %v172_v13 = vld [vmem:[#allocation7 + $0x250] sm:$0xff] }
  0xc4   :  { %1459 = vmatpush1.bf16.msra.mxu0 %v2537_v24  ;;  %1502 = vmatpush1.bf16.msra.mxu1 %v2539_v27  ;;  %v117_v24 = vld [vmem:[#allocation7 + $0x98] sm:$0xff]  ;;  %v2479_v27 = vcombine.low %v109_v15, %v113_v16  ;;  %v176_v15 = vld [vmem:[#allocation7 + $0x270] sm:$0xff] }
  0xc5   :  { %1460 = vmatprep.subr.bf16.mxu0 %v2546_v28  ;;  %1503 = vmatprep.subr.bf16.mxu1 %v2548_v31  ;;  %v2486_v28 = vcombine.high %v116_v21, %v120_v23  ;;  %v2488_v29 = vcombine.high %v117_v24, %v121_v25  ;;  %v128_v31 = vld [vmem:[#allocation7 + $0xf0] sm:$0xff]  ;;  %v173_v16 = vld [vmem:[#allocation7 + $0x258] sm:$0xff] }
  0xc6   :  { %v2493_v40 = vcombine.low %v124_v30, %v128_v31  ;;  %v180_v23 = vld [vmem:[#allocation7 + $0x290] sm:$0xff] }
  0xc8   :  { %1461 = vmatpush1.bf16.msra.mxu0 %v2545_v32  ;;  %1504 = vmatpush1.bf16.msra.mxu1 %v2547_v34  ;;  %v125_v32 = vld [vmem:[#allocation7 + $0xd8] sm:$0xff]  ;;  %v2487_v34 = vcombine.low %v117_v24, %v121_v25  ;;  %v184_v24 = vld [vmem:[#allocation7 + $0x2b0] sm:$0xff] }
  0xc9   :  { %1462 = vmatprep.subr.bf16.mxu0 %v2554_v35  ;;  %1505 = vmatprep.subr.bf16.mxu1 %v2556_v38  ;;  %v2494_v35 = vcombine.high %v124_v30, %v128_v31  ;;  %v2496_v36 = vcombine.high %v125_v32, %v129_v10  ;;  %v136_v38 = vld [vmem:[#allocation7 + $0x130] sm:$0xff]  ;;  %v181_v25 = vld [vmem:[#allocation7 + $0x298] sm:$0xff] }
  0xca   :  { %v2501_v47 = vcombine.low %v132_v37, %v136_v38  ;;  %v188_v31 = vld [vmem:[#allocation7 + $0x2d0] sm:$0xff] }
  0xcc   :  { %1463 = vmatpush1.bf16.msra.mxu0 %v2553_v39  ;;  %1506 = vmatpush1.bf16.msra.mxu1 %v2555_v41  ;;  %v133_v39 = vld [vmem:[#allocation7 + $0x118] sm:$0xff]  ;;  %v2495_v41 = vcombine.low %v125_v32, %v129_v10  ;;  %v192_v32 = vld [vmem:[#allocation7 + $0x2f0] sm:$0xff] }
  0xcd   :  { %1464 = vmatprep.subr.bf16.mxu0 %v2562_v42  ;;  %1507 = vmatprep.subr.bf16.mxu1 %v2564_v45  ;;  %v2502_v42 = vcombine.high %v132_v37, %v136_v38  ;;  %v141_v45 = vld [vmem:[#allocation7 + $0x158] sm:$0xff]  ;;  %v2503_v48 = vcombine.low %v133_v39, %v137_v0  ;;  %v196_v38 = vld [vmem:[#allocation7 + $0x310] sm:$0xff] }
  0xce   :  { %v189_v10 = vld [vmem:[#allocation7 + $0x2d8] sm:$0xff] }
  0xd0   :  { %1465 = vmatpush1.bf16.msra.mxu0 %v2561_v46  ;;  %1508 = vmatpush1.bf16.msra.mxu1 %v2563_v49  ;;  %v145_v46 = vld [vmem:[#allocation7 + $0x178] sm:$0xff]  ;;  %v2510_v49 = vcombine.high %v140_v43, %v144_v44 }
  0xd1   :  { %1466 = vmatprep.subr.bf16.mxu0 %v2570_v50  ;;  %1509 = vmatprep.subr.bf16.mxu1 %v2572_v53  ;;  %v2512_v50 = vcombine.high %v141_v45, %v145_v46  ;;  %v149_v53 = vld [vmem:[#allocation7 + $0x198] sm:$0xff] }
  0xd4   :  { %1467 = vmatpush1.bf16.msra.mxu0 %v2569_v54  ;;  %1510 = vmatpush1.bf16.msra.mxu1 %v2571_v55  ;;  %v153_v54 = vld [vmem:[#allocation7 + $0x1b8] sm:$0xff]  ;;  %v2509_v55 = vcombine.low %v140_v43, %v144_v44  ;;  %v204_v44 = vld [vmem:[#allocation7 + $0x350] sm:$0xff] }
  0xd5   :  { %1468 = vmatprep.subr.bf16.mxu0 %v2578_v56  ;;  %1511 = vmatprep.subr.bf16.mxu1 %v2580_v57  ;;  %v2511_v56 = vcombine.low %v141_v45, %v145_v46  ;;  %v2518_v57 = vcombine.high %v148_v51, %v152_v52  ;;  %v2520_v58 = vcombine.high %v149_v53, %v153_v54  ;;  %v208_v45 = vld [vmem:[#allocation7 + $0x370] sm:$0xff]  ;;  %v205_v46 = vld [vmem:[#allocation7 + $0x358] sm:$0xff] }
  0xd8   :  { %1469 = vmatpush1.bf16.msra.mxu0 %v2577_v62  ;;  %1512 = vmatpush1.bf16.msra.mxu1 %v2579_v63  ;;  %v161_v62 = vld [vmem:[#allocation7 + $0x1f8] sm:$0xff]  ;;  %v2517_v63 = vcombine.low %v148_v51, %v152_v52  ;;  %v212_v52 = vld [vmem:[#allocation7 + $0x390] sm:$0xff] }
  0xd9   :  { %1470 = vmatprep.subr.bf16.mxu0 %v2586_v1  ;;  %1513 = vmatprep.subr.bf16.mxu1 %v2588_v2  ;;  %v2519_v1 = vcombine.low %v149_v53, %v153_v54  ;;  %v2526_v2 = vcombine.high %v156_v59, %v160_v60  ;;  %v2528_v3 = vcombine.high %v157_v61, %v161_v62  ;;  %v216_v53 = vld [vmem:[#allocation7 + $0x3b0] sm:$0xff]  ;;  %v213_v54 = vld [vmem:[#allocation7 + $0x398] sm:$0xff] }
  0xdc   :  { %1471 = vmatpush1.bf16.msra.mxu0 %v2585_v7  ;;  %1514 = vmatpush1.bf16.msra.mxu1 %v2587_v8  ;;  %v169_v7 = vld [vmem:[#allocation7 + $0x238] sm:$0xff]  ;;  %v2525_v8 = vcombine.low %v156_v59, %v160_v60  ;;  %v220_v60 = vld [vmem:[#allocation7 + $0x3d0] sm:$0xff] }
  0xdd   :  { %1526 = vmatprep.subr.bf16.mxu0 %v2470_v9  ;;  %1569 = vmatprep.subr.bf16.mxu1 %v2472_v11  ;;  %v2527_v9 = vcombine.low %v157_v61, %v161_v62  ;;  %v2534_v11 = vcombine.high %v164_v4, %v168_v5  ;;  %v2536_v12 = vcombine.high %v165_v6, %v169_v7  ;;  %v224_v61 = vld [vmem:[#allocation7 + $0x3f0] sm:$0xff]  ;;  %v221_v62 = vld [vmem:[#allocation7 + $0x3d8] sm:$0xff] }
  0xdf   :  { %1473 = vmatmul.mubr.bf16.vlgmr.msra.gmra.mrb[0].mxu0 %v3125_v14  ;;  %1516 = vmatmul.mubr.bf16.vlgmr.msra.gmra.mrb[0].mxu1 %v3125_v14 }
  0xe0   :  { %1527 = vmatpush1.bf16.msra.mxu0 %v2469_v17  ;;  %1570 = vmatpush1.bf16.msra.mxu1 %v2471_v18  ;;  %v177_v17 = vld [vmem:[#allocation7 + $0x278] sm:$0xff]  ;;  %v2533_v18 = vcombine.low %v164_v4, %v168_v5  ;;  %v2589_v5 = vcombine.low %v220_v60, %v224_v61 }
  0xe1   :  { %1528 = vmatprep.subr.bf16.mxu0 %v2478_v19  ;;  %1571 = vmatprep.subr.bf16.mxu1 %v2480_v20  ;;  %v2535_v19 = vcombine.low %v165_v6, %v169_v7  ;;  %v2542_v20 = vcombine.high %v172_v13, %v176_v15  ;;  %v2544_v21 = vcombine.high %v173_v16, %v177_v17  ;;  %v2779_v7 = vld [vmem:[#allocation10 + $0x40] sm:$0xff]  }
  0xe2   :  { %1558 = vmatprep.mubr.bf16.mxu0 %v3119_v22  ;;  %1601 = vmatprep.mubr.bf16.mxu1 %v3119_v22  ;;  %v2504_v22 = vcombine.high %v133_v39, %v137_v0  ;;  %v200_v39 = vld [vmem:[#allocation7 + $0x330] sm:$0xff]  ;;  %v197_v0 = vld [vmem:[#allocation7 + $0x318] sm:$0xff] }
  0xe4   :  { %1529 = vmatpush1.bf16.msra.mxu0 %v2477_v26  ;;  %1572 = vmatpush1.bf16.msra.mxu1 %v2479_v27  ;;  %v185_v26 = vld [vmem:[#allocation7 + $0x2b8] sm:$0xff]  ;;  %v2541_v27 = vcombine.low %v172_v13, %v176_v15  ;;  %v2784_v13 = vld [vmem:[#allocation10 + $0xc8] sm:$0xff]  }
  0xe5   :  { %1530 = vmatprep.subr.bf16.mxu0 %v2486_v28  ;;  %1573 = vmatprep.subr.bf16.mxu1 %v2488_v29  ;;  %v2543_v28 = vcombine.low %v173_v16, %v177_v17  ;;  %v2550_v29 = vcombine.high %v180_v23, %v184_v24  ;;  %v2552_v30 = vcombine.high %v181_v25, %v185_v26  ;;  %v2785_v15 = vld [vmem:[#allocation10 + $0x8] sm:$0xff]   ;;  %v2787_v17 = vld [vmem:[#allocation10 + $0x50] sm:$0xff]  }
  0xe6   :  { %v2786_v16 = vld [vmem:[#allocation10 + $0x88] sm:$0xff]  }
  0xe8   :  { %1531 = vmatpush1.bf16.msra.mxu0 %v2485_v33  ;;  %1574 = vmatpush1.bf16.msra.mxu1 %v2487_v34  ;;  %v193_v33 = vld [vmem:[#allocation7 + $0x2f8] sm:$0xff]  ;;  %v2549_v34 = vcombine.low %v180_v23, %v184_v24 }
  0xe9   :  { %1532 = vmatprep.subr.bf16.mxu0 %v2494_v35  ;;  %1575 = vmatprep.subr.bf16.mxu1 %v2496_v36  ;;  %v2551_v35 = vcombine.low %v181_v25, %v185_v26  ;;  %v2558_v36 = vcombine.high %v188_v31, %v192_v32  ;;  %v2560_v37 = vcombine.high %v189_v10, %v193_v33  ;;  %v2792_v23 = vld [vmem:[#allocation10 + $0xd8] sm:$0xff]   ;;  %v2795_v25 = vld [vmem:[#allocation10 + $0x60] sm:$0xff]  }
  0xea   :  { %v2793_v24 = vld [vmem:[#allocation10 + $0x18] sm:$0xff]   ;;  %v2796_v26 = vld [vmem:[#allocation10 + $0xe0] sm:$0xff]  }
  0xec   :  { %1533 = vmatpush1.bf16.msra.mxu0 %v2493_v40  ;;  %1576 = vmatpush1.bf16.msra.mxu1 %v2495_v41  ;;  %v201_v40 = vld [vmem:[#allocation7 + $0x338] sm:$0xff]  ;;  %v2557_v41 = vcombine.low %v188_v31, %v192_v32  ;;  %v2801_v31 = vld [vmem:[#allocation10 + $0x28] sm:$0xff]  }
  0xed   :  { %1534 = vmatprep.subr.bf16.mxu0 %v2502_v42  ;;  %1577 = vmatprep.subr.bf16.mxu1 %v2504_v22  ;;  %v2559_v42 = vcombine.low %v189_v10, %v193_v33  ;;  %v2566_v22 = vcombine.high %v196_v38, %v200_v39  ;;  %v2568_v43 = vcombine.high %v197_v0, %v201_v40  ;;  %v2802_v32 = vld [vmem:[#allocation10 + $0xa8] sm:$0xff]   ;;  %v2803_v10 = vld [vmem:[#allocation10 + $0x70] sm:$0xff]  }
  0xee   :  { %v2804_v33 = vld [vmem:[#allocation10 + $0xf0] sm:$0xff]  }
  0xf0   :  { %1535 = vmatpush1.bf16.msra.mxu0 %v2501_v47  ;;  %1578 = vmatpush1.bf16.msra.mxu1 %v2503_v48  ;;  %v209_v47 = vld [vmem:[#allocation7 + $0x378] sm:$0xff]  ;;  %v2565_v48 = vcombine.low %v196_v38, %v200_v39 }
  0xf1   :  { %1536 = vmatprep.subr.bf16.mxu0 %v2510_v49  ;;  %1579 = vmatprep.subr.bf16.mxu1 %v2512_v50  ;;  %v2567_v49 = vcombine.low %v197_v0, %v201_v40  ;;  %v2574_v50 = vcombine.high %v204_v44, %v208_v45  ;;  %v2576_v51 = vcombine.high %v205_v46, %v209_v47  ;;  %v2809_v38 = vld [vmem:[#allocation10 + $0x38] sm:$0xff]   ;;  %v2811_v0 = vld [vmem:[#allocation10 + $0x140] sm:$0xff]  }
  0xf2   :  { %v2810_v39 = vld [vmem:[#allocation10 + $0xb8] sm:$0xff]   ;;  %v2812_v40 = vld [vmem:[#allocation10 + $0x1c0] sm:$0xff]  }
  0xf4   :  { %1537 = vmatpush1.bf16.msra.mxu0 %v2509_v55  ;;  %1580 = vmatpush1.bf16.msra.mxu1 %v2511_v56  ;;  %v217_v55 = vld [vmem:[#allocation7 + $0x3b8] sm:$0xff]  ;;  %v2573_v56 = vcombine.low %v204_v44, %v208_v45 }
  0xf5   :  { %1538 = vmatprep.subr.bf16.mxu0 %v2518_v57  ;;  %1581 = vmatprep.subr.bf16.mxu1 %v2520_v58  ;;  %v2575_v57 = vcombine.low %v205_v46, %v209_v47  ;;  %v2582_v58 = vcombine.high %v212_v52, %v216_v53  ;;  %v2584_v59 = vcombine.high %v213_v54, %v217_v55 }
  0xf8   :  { %1539 = vmatpush1.bf16.msra.mxu0 %v2517_v63  ;;  %1582 = vmatpush1.bf16.msra.mxu1 %v2519_v1  ;;  %v225_v63 = vld [vmem:[#allocation7 + $0x3f8] sm:$0xff]  ;;  %v2581_v1 = vcombine.low %v212_v52, %v216_v53 }
  0xf9   :  { %1540 = vmatprep.subr.bf16.mxu0 %v2526_v2  ;;  %1583 = vmatprep.subr.bf16.mxu1 %v2528_v3  ;;  %v2583_v2 = vcombine.low %v213_v54, %v217_v55  ;;  %v2590_v3 = vcombine.high %v220_v60, %v224_v61  ;;  %v2592_v4 = vcombine.high %v221_v62, %v225_v63 }
  0xfa   :  { %v2591_v6 = vcombine.low %v221_v62, %v225_v63 }
  0xfc   :  { %1541 = vmatpush1.bf16.msra.mxu0 %v2525_v8  ;;  %1584 = vmatpush1.bf16.msra.mxu1 %v2527_v9  ;;  %v2780_v8 = vld [vmem:[#allocation10 + $0xc0] sm:$0xff]  }
  0xfd   :  { %1542 = vmatprep.subr.bf16.mxu0 %v2534_v11  ;;  %1585 = vmatprep.subr.bf16.mxu1 %v2536_v12  ;;  %v2781_v9 = vld [vmem:[#allocation10] sm:$0xff]   ;;  %v2783_v12 = vld [vmem:[#allocation10 + $0x48] sm:$0xff]  }
  0xfe   :  { %v2782_v11 = vld [vmem:[#allocation10 + $0x80] sm:$0xff]  }
 0x100   :  { %1543 = vmatpush1.bf16.msra.mxu0 %v2533_v18  ;;  %1586 = vmatpush1.bf16.msra.mxu1 %v2535_v19  ;;  %v2788_v18 = vld [vmem:[#allocation10 + $0xd0] sm:$0xff]  }
 0x101   :  { %1544 = vmatprep.subr.bf16.mxu0 %v2542_v20  ;;  %1587 = vmatprep.subr.bf16.mxu1 %v2544_v21  ;;  %v2789_v19 = vld [vmem:[#allocation10 + $0x10] sm:$0xff]   ;;  %v2791_v21 = vld [vmem:[#allocation10 + $0x58] sm:$0xff]  }
 0x102   :  { %v2790_v20 = vld [vmem:[#allocation10 + $0x90] sm:$0xff]  }
 0x104   :  { %1545 = vmatpush1.bf16.msra.mxu0 %v2541_v27  ;;  %1588 = vmatpush1.bf16.msra.mxu1 %v2543_v28  ;;  %v2797_v27 = vld [vmem:[#allocation10 + $0x20] sm:$0xff]  }
 0x105   :  { %1546 = vmatprep.subr.bf16.mxu0 %v2550_v29  ;;  %1589 = vmatprep.subr.bf16.mxu1 %v2552_v30  ;;  %v2798_v28 = vld [vmem:[#allocation10 + $0xa0] sm:$0xff]   ;;  %v2799_v29 = vld [vmem:[#allocation10 + $0x68] sm:$0xff]  }
 0x106   :  { %v2800_v30 = vld [vmem:[#allocation10 + $0xe8] sm:$0xff]  }
 0x108   :  { %1547 = vmatpush1.bf16.msra.mxu0 %v2549_v34  ;;  %1590 = vmatpush1.bf16.msra.mxu1 %v2551_v35  ;;  %v2805_v34 = vld [vmem:[#allocation10 + $0x30] sm:$0xff]  }
 0x109   :  { %1548 = vmatprep.subr.bf16.mxu0 %v2558_v36  ;;  %1591 = vmatprep.subr.bf16.mxu1 %v2560_v37  ;;  %v2806_v35 = vld [vmem:[#allocation10 + $0xb0] sm:$0xff]   ;;  %v2807_v36 = vld [vmem:[#allocation10 + $0x78] sm:$0xff]  }
 0x10a   :  { %v2808_v37 = vld [vmem:[#allocation10 + $0xf8] sm:$0xff]  }
 0x10c   :  { %1549 = vmatpush1.bf16.msra.mxu0 %v2557_v41  ;;  %1592 = vmatpush1.bf16.msra.mxu1 %v2559_v42  ;;  %v1614_v41 = vlaneseq }
 0x10d   :  { %1550 = vmatprep.subr.bf16.mxu0 %v2566_v22  ;;  %1593 = vmatprep.subr.bf16.mxu1 %v2568_v43  ;;  %v3139_v43 = vld [vmem:[%s3178_s4] sm:$0xff] }
 0x10e   :  { %v3133_v42 = vshrl.u32 %v1614_v41, 7  ;;  %v2838_v41 = vld [vmem:[#allocation10 + $0x1b0] sm:$0xff]  }
 0x110   :  { %1551 = vmatpush1.bf16.msra.mxu0 %v2565_v48  ;;  %1594 = vmatpush1.bf16.msra.mxu1 %v2567_v49  ;;  %v1616_v22 = vsub.s32 0, %v3133_v42  ;;  %v1624_v44 = vsub.s32 2, %v3133_v42  ;;  %v1620_v45 = vsub.s32 1, %v3133_v42  ;;  %v1628_v46 = vsub.s32 3, %v3133_v42 }
 0x111   :  { %1552 = vmatprep.subr.bf16.mxu0 %v2574_v50  ;;  %1595 = vmatprep.subr.bf16.mxu1 %v2576_v51 }
 0x112   :  { %v1617_v47 = vrot.slane %v3139_v43, %v1616_v22  ;;  %v1625_v48 = vrot.slane %v3139_v43, %v1624_v44  ;;  %v1621_v49 = vrot.slane %v3139_v43, %v1620_v45  ;;  %v1629_v50 = vrot.slane %v3139_v43, %v1628_v46  ;;  %v2839_v22 = vld [vmem:[#allocation10 + $0x178] sm:$0xff]  }
 0x113   :  { %v2840_v44 = vld [vmem:[#allocation10 + $0x1f8] sm:$0xff]  }
 0x114   :  { %1553 = vmatpush1.bf16.msra.mxu0 %v2573_v56  ;;  %1596 = vmatpush1.bf16.msra.mxu1 %v2575_v57  ;;  %v2841_v45 = vld [vmem:[#allocation10 + $0x138] sm:$0xff]  }
 0x115   :  { %1554 = vmatprep.subr.bf16.mxu0 %v2582_v58  ;;  %1597 = vmatprep.subr.bf16.mxu1 %v2584_v59  ;;  %v2842_v46 = vld [vmem:[#allocation10 + $0x1b8] sm:$0xff]  }
 0x118   :  { %1555 = vmatpush1.bf16.msra.mxu0 %v2581_v1  ;;  %1598 = vmatpush1.bf16.msra.mxu1 %v2583_v2 }
 0x119   :  { %1556 = vmatprep.subr.bf16.mxu0 %v2590_v3  ;;  %1599 = vmatprep.subr.bf16.mxu1 %v2592_v4 }
 0x11c   :  { %1557 = vmatpush1.bf16.msra.mxu0 %v2589_v5  ;;  %1600 = vmatpush1.bf16.msra.mxu1 %v2591_v6 }
 0x11d   :  { %2658 = vmatprep.subr.bf16.mxu0 %v2779_v7  ;;  %2680 = vmatprep.subr.bf16.mxu1 %v2780_v8 }
 0x11f   :  { %1559 = vmatmul.mubr.bf16.vlgmr.msra.gmra.mrb[4].mxu0 %v3125_v14  ;;  %1602 = vmatmul.mubr.bf16.vlgmr.msra.gmra.mrb[4].mxu1 %v3125_v14  ;;  %v2794_v14 = vld [vmem:[#allocation10 + $0x98] sm:$0xff]  }
 0x120   :  { %2659 = vmatpush3.bf16.msra.mxu0 %v2781_v9  ;;  %2681 = vmatpush3.bf16.msra.mxu1 %v2782_v11 }
 0x121   :  { %2660 = vmatprep.subr.bf16.mxu0 %v2783_v12  ;;  %2682 = vmatprep.subr.bf16.mxu1 %v2784_v13 }
 0x124   :  { %2661 = vmatpush3.bf16.msra.mxu0 %v2785_v15  ;;  %2683 = vmatpush3.bf16.msra.mxu1 %v2786_v16 }
 0x125   :  { %2662 = vmatprep.subr.bf16.mxu0 %v2787_v17  ;;  %2684 = vmatprep.subr.bf16.mxu1 %v2788_v18  ;;  %v2813_v17 = vld [vmem:[#allocation10 + $0x100] sm:$0xff]  }
 0x128   :  { %2663 = vmatpush3.bf16.msra.mxu0 %v2789_v19  ;;  %2685 = vmatpush3.bf16.msra.mxu1 %v2790_v20  ;;  %v2814_v19 = vld [vmem:[#allocation10 + $0x180] sm:$0xff]   ;;  %v2815_v20 = vld [vmem:[#allocation10 + $0x148] sm:$0xff]  }
 0x129   :  { %2664 = vmatprep.subr.bf16.mxu0 %v2791_v21  ;;  %2686 = vmatprep.subr.bf16.mxu1 %v2792_v23  ;;  %v2816_v21 = vld [vmem:[#allocation10 + $0x1c8] sm:$0xff]  }
 0x12a   :  { %v2817_v23 = vld [vmem:[#allocation10 + $0x108] sm:$0xff]  }
 0x12c   :  { %2665 = vmatpush3.bf16.msra.mxu0 %v2793_v24  ;;  %2687 = vmatpush3.bf16.msra.mxu1 %v2794_v14  ;;  %v2818_v24 = vld [vmem:[#allocation10 + $0x188] sm:$0xff]   ;;  %v2819_v14 = vld [vmem:[#allocation10 + $0x150] sm:$0xff]  }
 0x12d   :  { %2666 = vmatprep.subr.bf16.mxu0 %v2795_v25  ;;  %2688 = vmatprep.subr.bf16.mxu1 %v2796_v26  ;;  %v2820_v25 = vld [vmem:[#allocation10 + $0x1d0] sm:$0xff]  }
 0x12e   :  { %v2821_v26 = vld [vmem:[#allocation10 + $0x110] sm:$0xff]  }
 0x130   :  { %2667 = vmatpush3.bf16.msra.mxu0 %v2797_v27  ;;  %2689 = vmatpush3.bf16.msra.mxu1 %v2798_v28  ;;  %v2822_v27 = vld [vmem:[#allocation10 + $0x190] sm:$0xff]   ;;  %v2823_v28 = vld [vmem:[#allocation10 + $0x158] sm:$0xff]  }
 0x131   :  { %2668 = vmatprep.subr.bf16.mxu0 %v2799_v29  ;;  %2690 = vmatprep.subr.bf16.mxu1 %v2800_v30  ;;  %v2824_v29 = vld [vmem:[#allocation10 + $0x1d8] sm:$0xff]  }
 0x132   :  { %v2825_v30 = vld [vmem:[#allocation10 + $0x118] sm:$0xff]  }
 0x134   :  { %2669 = vmatpush3.bf16.msra.mxu0 %v2801_v31  ;;  %2691 = vmatpush3.bf16.msra.mxu1 %v2802_v32  ;;  %v2826_v31 = vld [vmem:[#allocation10 + $0x198] sm:$0xff]   ;;  %v2827_v32 = vld [vmem:[#allocation10 + $0x160] sm:$0xff]  }
 0x135   :  { %2670 = vmatprep.subr.bf16.mxu0 %v2803_v10  ;;  %2692 = vmatprep.subr.bf16.mxu1 %v2804_v33  ;;  %v2828_v10 = vld [vmem:[#allocation10 + $0x1e0] sm:$0xff]  }
 0x136   :  { %v2829_v33 = vld [vmem:[#allocation10 + $0x120] sm:$0xff]  }
 0x138   :  { %2671 = vmatpush3.bf16.msra.mxu0 %v2805_v34  ;;  %2693 = vmatpush3.bf16.msra.mxu1 %v2806_v35  ;;  %v2830_v34 = vld [vmem:[#allocation10 + $0x1a0] sm:$0xff]   ;;  %v2831_v35 = vld [vmem:[#allocation10 + $0x168] sm:$0xff]  }
 0x139   :  { %2672 = vmatprep.subr.bf16.mxu0 %v2807_v36  ;;  %2694 = vmatprep.subr.bf16.mxu1 %v2808_v37  ;;  %v2832_v36 = vld [vmem:[#allocation10 + $0x1e8] sm:$0xff]  }
 0x13a   :  { %v2833_v37 = vld [vmem:[#allocation10 + $0x128] sm:$0xff]  }
 0x13c   :  { %2673 = vmatpush3.bf16.msra.mxu0 %v2809_v38  ;;  %2695 = vmatpush3.bf16.msra.mxu1 %v2810_v39  ;;  %v2834_v38 = vld [vmem:[#allocation10 + $0x1a8] sm:$0xff]   ;;  %v2835_v39 = vld [vmem:[#allocation10 + $0x170] sm:$0xff]  }
 0x13d   :  { %2702 = vmatprep.subr.bf16.mxu0 %v2811_v0  ;;  %2724 = vmatprep.subr.bf16.mxu1 %v2812_v40  ;;  %v2836_v0 = vld [vmem:[#allocation10 + $0x1f0] sm:$0xff]  }
 0x13e   :  { %v2837_v40 = vld [vmem:[#allocation10 + $0x130] sm:$0xff]  }
 0x1b2   :  { %v1474_v51 = vpop.f32.mrb[0].mxu0  ;;  %v1517_v53 = vpop.f32.mrb[0].mxu1 }
 0x1b3   :  { %v1654_v52 = vadd.f32 %v1617_v47, %v1474_v51  ;;  %v1476_v54 = vpop.f32.mrb[1].mxu0  ;;  %v1656_v55 = vadd.f32 %v1625_v48, %v1517_v53  ;;  %v1519_v57 = vpop.f32.mrb[1].mxu1 }
 0x1b4   :  { %v1655_v56 = vadd.f32 %v1621_v49, %v1476_v54  ;;  %v1478_v58 = vpop.f32.mrb[2].mxu0  ;;  %v1657_v59 = vadd.f32 %v1629_v50, %v1519_v57  ;;  %v1521_v61 = vpop.f32.mrb[2].mxu1 }
 0x1b5   :  { %v1662_v60 = vadd.f32 %v1617_v47, %v1478_v58  ;;  %v1480_v62 = vpop.f32.mrb[3].mxu0  ;;  %v1664_v63 = vadd.f32 %v1625_v48, %v1521_v61  ;;  %v1523_v2 = vpop.f32.mrb[3].mxu1  ;;  %v1670_v3 = vmax.f32 %v1654_v52, 0.0  ;;  %v1672_v6 = vmax.f32 %v1656_v55, 0.0 }
 0x1b6   :  { %v1663_v1 = vadd.f32 %v1621_v49, %v1480_v62  ;;  %v1665_v5 = vadd.f32 %v1629_v50, %v1523_v2  ;;  %v1671_v7 = vmax.f32 %v1655_v56, 0.0  ;;  %v1673_v11 = vmax.f32 %v1657_v59, 0.0 }
 0x1b7   :  { %v1678_v4 = vmax.f32 %v1662_v60, 0.0  ;;  %v1680_v8 = vmax.f32 %v1664_v63, 0.0  ;;  %v1632_v47 = vsub.s32 4, %v3133_v42  ;;  %v1640_v48 = vsub.s32 6, %v3133_v42 }
 0x1b8   :  { %v1679_v9 = vmax.f32 %v1663_v1, 0.0  ;;  %v1681_v13 = vmax.f32 %v1665_v5, 0.0  ;;  %v1636_v49 = vsub.s32 5, %v3133_v42  ;;  %v1644_v50 = vsub.s32 7, %v3133_v42 }
 0x1b9   :  { %v1686_v12 = vpack.c.bf16 %v1678_v4, %v1670_v3  ;;  %v1688_v15 = vpack.c.bf16 %v1680_v8, %v1672_v6  ;;  %v1633_v51 = vrot.slane %v3139_v43, %v1632_v47  ;;  %v1641_v52 = vrot.slane %v3139_v43, %v1640_v48 }
 0x1ba   :  { %v1687_v16 = vpack.c.bf16 %v1679_v9, %v1671_v7  ;;  %v1689_v18 = vpack.c.bf16 %v1681_v13, %v1673_v11  ;;  %v1637_v53 = vrot.slane %v3139_v43, %v1636_v49  ;;  %v1645_v54 = vrot.slane %v3139_v43, %v1644_v50 }
 0x1bc   :  { %2245 = vmatprep.mubr.bf16.mxu0 %v1687_v16  ;;  %2286 = vmatprep.mubr.bf16.mxu1 %v1689_v18 }
 0x1bd   :  { %2246 = vmatmul.mubr.bf16.vlgmr.msra.gmra.mrb[8].mxu0 %v1686_v12  ;;  %2287 = vmatmul.mubr.bf16.vlgmr.msra.gmra.mrb[8].mxu1 %v1688_v15 }
 0x1be   :  { %2703 = vmatpush3.bf16.msra.mxu0 %v2813_v17  ;;  %2725 = vmatpush3.bf16.msra.mxu1 %v2814_v19 }
 0x1bf   :  { %2704 = vmatprep.subr.bf16.mxu0 %v2815_v20  ;;  %2726 = vmatprep.subr.bf16.mxu1 %v2816_v21 }
 0x1c2   :  { %2705 = vmatpush3.bf16.msra.mxu0 %v2817_v23  ;;  %2727 = vmatpush3.bf16.msra.mxu1 %v2818_v24  ;;  %v2593_v23 = vld [vmem:[%s3180_s6] ss:$0 sm:$0xff]  ;;  %s2995_s6 = smov [#allocation11]  }
 0x1c3   :  { %2706 = vmatprep.subr.bf16.mxu0 %v2819_v14  ;;  %2728 = vmatprep.subr.bf16.mxu1 %v2820_v25  ;;  %s2384_s27 = sshll.u32 %s2995_s6, 4  ;;  %s2385_s27 = int_to_ptr.vmem [resolvable:$true] %s2384_s27 }
 0x1c4   :  { %s2953_s22 = scalar_lea.vmem %s2385_s27, 256  ;;  %p2958_p13 = scmp.lt.s32.totalorder %s2385_s27, %s2385_s27 }
 0x1c5   :  { %p2954_p12 = scmp.ne.s32.totalorder %s2385_s27, %s2953_s22  ;;  %p2959_p0 = scmp.lt.s32.totalorder %s2953_s22, %s2953_s22 }
 0x1c6   :  { %2707 = vmatpush3.bf16.msra.mxu0 %v2821_v26  ;;  %2729 = vmatpush3.bf16.msra.mxu1 %v2822_v27 }
 0x1c7   :  { %2708 = vmatprep.subr.bf16.mxu0 %v2823_v28  ;;  %2730 = vmatprep.subr.bf16.mxu1 %v2824_v29  ;;  %p2960_p1 = por %p2959_p0, %p2958_p13 }
 0x1c9   :  { %p2961_p2 = pnand %p2960_p1, %p2954_p12 }
 0x1ca   :  { %2709 = vmatpush3.bf16.msra.mxu0 %v2825_v30  ;;  %2731 = vmatpush3.bf16.msra.mxu1 %v2826_v31 }
 0x1cb   :  { %2710 = vmatprep.subr.bf16.mxu0 %v2827_v32  ;;  %2732 = vmatprep.subr.bf16.mxu1 %v2828_v10 }
 0x1ce   :  { %2711 = vmatpush3.bf16.msra.mxu0 %v2829_v33  ;;  %2733 = vmatpush3.bf16.msra.mxu1 %v2830_v34 }
 0x1cf   :  { %2712 = vmatprep.subr.bf16.mxu0 %v2831_v35  ;;  %2734 = vmatprep.subr.bf16.mxu1 %v2832_v36 }
 0x1d2   :  { %2713 = vmatpush3.bf16.msra.mxu0 %v2833_v37  ;;  %2735 = vmatpush3.bf16.msra.mxu1 %v2834_v38 }
 0x1d3   :  { %2714 = vmatprep.subr.bf16.mxu0 %v2835_v39  ;;  %2736 = vmatprep.subr.bf16.mxu1 %v2836_v0 }
 0x1d6   :  { %2715 = vmatpush3.bf16.msra.mxu0 %v2837_v40  ;;  %2737 = vmatpush3.bf16.msra.mxu1 %v2838_v41 }
 0x1d7   :  { %2716 = vmatprep.subr.bf16.mxu0 %v2839_v22  ;;  %2738 = vmatprep.subr.bf16.mxu1 %v2840_v44 }
 0x1da   :  { %2717 = vmatpush3.bf16.msra.mxu0 %v2841_v45  ;;  %2739 = vmatpush3.bf16.msra.mxu1 %v2842_v46 }
 0x1f2   :  { %v1560_v55 = vpop.f32.mrb[4].mxu0  ;;  %v1603_v57 = vpop.f32.mrb[4].mxu1 }
 0x1f3   :  { %v1658_v56 = vadd.f32 %v1633_v51, %v1560_v55  ;;  %v1562_v58 = vpop.f32.mrb[5].mxu0  ;;  %v1660_v59 = vadd.f32 %v1641_v52, %v1603_v57  ;;  %v1605_v61 = vpop.f32.mrb[5].mxu1 }
 0x1f4   :  { %v1659_v60 = vadd.f32 %v1637_v53, %v1562_v58  ;;  %v1564_v62 = vpop.f32.mrb[6].mxu0  ;;  %v1661_v63 = vadd.f32 %v1645_v54, %v1605_v61  ;;  %v1607_v2 = vpop.f32.mrb[6].mxu1 }
 0x1f5   :  { %v1666_v1 = vadd.f32 %v1633_v51, %v1564_v62  ;;  %v1566_v42 = vpop.f32.mrb[7].mxu0  ;;  %v1668_v3 = vadd.f32 %v1641_v52, %v1607_v2  ;;  %v1609_v5 = vpop.f32.mrb[7].mxu1  ;;  %v1674_v6 = vmax.f32 %v1658_v56, 0.0  ;;  %v1676_v9 = vmax.f32 %v1660_v59, 0.0 }
 0x1f6   :  { %v1667_v4 = vadd.f32 %v1637_v53, %v1566_v42  ;;  %v1669_v8 = vadd.f32 %v1645_v54, %v1609_v5  ;;  %v1675_v43 = vmax.f32 %v1659_v60, 0.0  ;;  %v1677_v13 = vmax.f32 %v1661_v63, 0.0 }
 0x1f7   :  { %v1682_v7 = vmax.f32 %v1666_v1, 0.0  ;;  %v1684_v11 = vmax.f32 %v1668_v3, 0.0 }
 0x1f8   :  { %v1683_v12 = vmax.f32 %v1667_v4, 0.0  ;;  %v1685_v16 = vmax.f32 %v1669_v8, 0.0 }
 0x1f9   :  { %v1690_v15 = vpack.c.bf16 %v1682_v7, %v1674_v6  ;;  %v1692_v17 = vpack.c.bf16 %v1684_v11, %v1676_v9 }
 0x1fa   :  { %v1691_v18 = vpack.c.bf16 %v1683_v12, %v1675_v43  ;;  %v1693_v19 = vpack.c.bf16 %v1685_v16, %v1677_v13 }
 0x1fc   :  { %2327 = vmatprep.mubr.bf16.mxu0 %v1691_v18  ;;  %2368 = vmatprep.mubr.bf16.mxu1 %v1693_v19 }
 0x1fd   :  { %2328 = vmatmul.mubr.bf16.vlgmr.msra.gmra.mrb[12].mxu0 %v1690_v15  ;;  %2369 = vmatmul.mubr.bf16.vlgmr.msra.gmra.mrb[12].mxu1 %v1692_v17 }
 0x290   :  { %v2674_v20 = vpop.f32.mrb[8].mxu0  ;;  %v2696_v21 = vpop.f32.mrb[8].mxu1 }
 0x291   :  { %v2675_v24 = vpop.f32.mrb[9].mxu0  ;;  %v2697_v25 = vpop.f32.mrb[9].mxu1 }
 0x292   :  { %v2676_v14 = vadd.f32 %v2675_v24, %v2674_v20  ;;  %v2677_v26 = vpop.f32.mrb[10].mxu0  ;;  %v2698_v27 = vadd.f32 %v2697_v25, %v2696_v21  ;;  %v2699_v28 = vpop.f32.mrb[10].mxu1 }
 0x293   :  { %v2678_v29 = vpop.f32.mrb[11].mxu0  ;;  %v2700_v32 = vpop.f32.mrb[11].mxu1 }
 0x294   :  { %v2248_v30 = vadd.f32 %v2676_v14, %v2593_v23  ;;  %v2679_v31 = vadd.f32 %v2678_v29, %v2677_v26  ;;  %v2701_v10 = vadd.f32 %v2700_v32, %v2699_v28 }
 0x296   :  { %v2289_v33 = vadd.f32 %v2698_v27, %v2248_v30  ;;  %v2251_v34 = vadd.f32 %v2679_v31, %v2593_v23 }
 0x298   :  { %v2292_v35 = vadd.f32 %v2701_v10, %v2251_v34 }
 0x2d0   :  { %v2718_v36 = vpop.f32.mrb[12].mxu0  ;;  %v2740_v37 = vpop.f32.mrb[12].mxu1 }
 0x2d1   :  { %v2719_v38 = vpop.f32.mrb[13].mxu0  ;;  %v2741_v0 = vpop.f32.mrb[13].mxu1 }
 0x2d2   :  { %v2720_v39 = vadd.f32 %v2719_v38, %v2718_v36  ;;  %v2721_v40 = vpop.f32.mrb[14].mxu0  ;;  %v2742_v41 = vadd.f32 %v2741_v0, %v2740_v37  ;;  %v2743_v22 = vpop.f32.mrb[14].mxu1 }
 0x2d3   :  { %v2722_v44 = vpop.f32.mrb[15].mxu0  ;;  %v2744_v47 = vpop.f32.mrb[15].mxu1 }
 0x2d4   :  { %v2330_v45 = vadd.f32 %v2720_v39, %v2289_v33  ;;  %v2723_v46 = vadd.f32 %v2722_v44, %v2721_v40  ;;  %v2745_v48 = vadd.f32 %v2744_v47, %v2743_v22 }
 0x2d6   :  { %v2371_v49 = vadd.f32 %v2742_v41, %v2330_v45  ;;  %v2333_v50 = vadd.f32 %v2723_v46, %v2292_v35 }
 0x2d8   :  { %2377 = vst [vmem:[#allocation11] sm:$0xff] %v2371_v49  ;;  %v2374_v51 = vadd.f32 %v2745_v48, %v2333_v50 }
 0x2da   :  { %2378 = vst [vmem:[#allocation11 + $0x8] sm:$0xff] %v2374_v51 }
 0x2db   :  { %2964 = shalt.err (!%p2961_p2)
}
 0x2dc   :  { %s2965_s1 = scalar_lea.hbm %s3181_s7, 256 }
 0x2dd   :  { %p2966_p3 = scmp.ne.s32.totalorder %s3181_s7, %s2965_s1  ;;  %p2969_p4 = scmp.lt.u32.totalorder %s2965_s1, %s3181_s7 }
 0x2df   :  { %p2971_p5 = pnand %p2969_p4, %p2966_p3 }
 0x2e1   :  { %2974 = shalt.err (!%p2971_p5)
}
 0x2e2   :  { %2390 = dma.vmem_to_hbm [thread:$0]  %s2385_s27, 256, %s3181_s7, [#allocation4], %s2990_s3, %s2990_s3, %s2991_s16  }
 0x2e3   :  { %2981 = dma.done.wait [#allocation4], 256  }
 0x2e4   :  { %2982 = vsyncadd [#allocation4], 4294967040 }
 0x2e5   :  { %2394 = vsyncpa [#allocation3], 1 }
 0x2e6   :  { %2395 = vsyncpa [#allocation6], 1 }
 0x2e7   :  { %2396 = vsyncpa [#allocation9], 1 }
 0x2e8   :  { %2397 = vsyncpa [#allocation4], 1 }

</bundles_post_ra>
